<compile_context>
chip_gen: v7x
topology: tpu7x:2x2x1
jax: 0.10.0
libtpu: 0.0.40
codegen_flags: <defaults>
</compile_context>

<pallas_src>
import functools

import jax
import jax.numpy as jnp
from jax import lax
from jax.experimental import pallas as pl
from jax.experimental.pallas import tpu as pltpu


def _lstm_kernel(*refs, num_layers, hidden, seq_len, batch, use_sigmoid):
    """All-VMEM LSTM forward.

    refs = [x (T*B, I)]
           + [w_ih_l (in, 4H), w_hh_l (H, 4H), b_l (1, 4H)] * num_layers
           + [fc_w (1, H), fc_b (1, 1)]
           + [out (B, 1)]                        # output ref
           + [seq (T*B, H), xproj (T*B, 4H)]     # scratch refs
    Gate column order inside the 4H axis is (i, f, o, g).
    """
    H, T, B = hidden, seq_len, batch
    x_ref = refs[0]
    layer_refs = refs[1:1 + 3 * num_layers]
    fcw_ref = refs[1 + 3 * num_layers]
    fcb_ref = refs[2 + 3 * num_layers]
    out_ref = refs[3 + 3 * num_layers]
    seq_ref = refs[4 + 3 * num_layers]
    xproj_ref = refs[5 + 3 * num_layers]

    h_last = None
    for l in range(num_layers):
        w_ih = layer_refs[3 * l][...]       # (in_features, 4H)
        w_hh = layer_refs[3 * l + 1][...]   # (H, 4H)
        bias = layer_refs[3 * l + 2][...]   # (1, 4H)

        # Hoisted input projection for ALL timesteps: one well-shaped matmul
        # instead of T tiny ones inside the recurrence.
        x_all = x_ref[...] if l == 0 else seq_ref[...]          # (T*B, in)
        xproj_ref[...] = (
            jnp.dot(x_all, w_ih, preferred_element_type=jnp.float32) + bias)

        write_seq = l < num_layers - 1   # last layer: only h_last is consumed

        def step(t, carry, w_hh=w_hh, write_seq=write_seq):
            h, c = carry
            row = pl.multiple_of(t * B, 8)                      # sublane-aligned
            gates = xproj_ref[pl.ds(row, B), :] + jnp.dot(
                h, w_hh, preferred_element_type=jnp.float32)    # (B, 4H)
            sg = jax.nn.sigmoid(gates[:, :3 * H])               # i, f, o block
            gg = jnp.tanh(gates[:, 3 * H:])                     # g block
            i_g = sg[:, 0 * H:1 * H]
            f_g = sg[:, 1 * H:2 * H]
            o_g = sg[:, 2 * H:3 * H]
            c = f_g * c + i_g * gg
            h = o_g * jnp.tanh(c)
            if write_seq:
                seq_ref[pl.ds(row, B), :] = h
            return (h, c)

        h0 = jnp.zeros((B, H), jnp.float32)
        c0 = jnp.zeros((B, H), jnp.float32)
        h_last, _ = lax.fori_loop(0, T, step, (h0, c0), unroll=True)

    # Final Linear(H, 1): VPU multiply + lane reduction (no 1-wide MXU call).
    out = jnp.sum(h_last * fcw_ref[...], axis=1, keepdims=True) + fcb_ref[...]
    if use_sigmoid:
        out = jax.nn.sigmoid(out)
    out_ref[...] = out.astype(out_ref.dtype)


def _reorder_gates(w_ifgo, H):
    """Reorder the 4H columns from PyTorch's (i, f, g, o) to (i, f, o, g)."""
    i = w_ifgo[:, 0 * H:1 * H]
    f = w_ifgo[:, 1 * H:2 * H]
    g = w_ifgo[:, 2 * H:3 * H]
    o = w_ifgo[:, 3 * H:4 * H]
    return jnp.concatenate([i, f, o, g], axis=1)


def lstm_model_forward(x, params, *, hidden_size, num_layers, output_activation=None):
    """x: (B, T, I) float32 (batch_first, like nn.LSTM). Returns (B, 1)."""
    B, T, I = x.shape
    H = hidden_size
    SUBLANE = 8                                   # f32 sublane multiple
    Bp = ((B + SUBLANE - 1) // SUBLANE) * SUBLANE

    x_tbi = jnp.transpose(x, (1, 0, 2)).astype(jnp.float32)        # (T, B, I)
    if Bp != B:
        x_tbi = jnp.pad(x_tbi, ((0, 0), (0, Bp - B), (0, 0)))      # pad batch
    x_flat = x_tbi.reshape(T * Bp, I)                              # time-major rows

    inputs = [x_flat]
    for l in range(num_layers):
        w_ih, w_hh, b_ih, b_hh = params[f'layer{l}']
        inputs.append(_reorder_gates(jnp.asarray(w_ih, jnp.float32).T, H))   # (in, 4H)
        inputs.append(_reorder_gates(jnp.asarray(w_hh, jnp.float32).T, H))   # (H, 4H)
        inputs.append(_reorder_gates(
            (b_ih + b_hh).astype(jnp.float32).reshape(1, 4 * H), H))         # (1, 4H)
    inputs.append(jnp.asarray(params['fc_w'], jnp.float32).reshape(1, H))    # (1, H)
    inputs.append(jnp.asarray(params['fc_b'], jnp.float32).reshape(1, 1))    # (1, 1)

    kernel = functools.partial(
        _lstm_kernel, num_layers=num_layers, hidden=H, seq_len=T, batch=Bp,
        use_sigmoid=(output_activation == 'sigmoid'))

    # Explicit VMEM budget: 2x headroom over (inputs + scratch), floor at 16 MiB
    # (v5e scoped default), ceiling at 64 MiB (v7x physical per-TC VMEM).
    scratch_elems = T * Bp * H + T * Bp * 4 * H
    input_elems = sum(int(a.size) for a in inputs) + Bp
    vmem_limit = int(min(max(8 * (scratch_elems + input_elems), 16 * 1024 * 1024),
                         64 * 1024 * 1024))

    out = pl.pallas_call(
        kernel,
        out_shape=jax.ShapeDtypeStruct((Bp, 1), jnp.float32),
        in_specs=[pl.BlockSpec(memory_space=pltpu.MemorySpace.VMEM)] * len(inputs),
        out_specs=pl.BlockSpec(memory_space=pltpu.MemorySpace.VMEM),
        scratch_shapes=[pltpu.VMEM((T * Bp, H), jnp.float32),
                        pltpu.VMEM((T * Bp, 4 * H), jnp.float32)],
        compiler_params=pltpu.CompilerParams(vmem_limit_bytes=vmem_limit),
    )(*inputs)
    return out[:B]


def _reference_forward(x, params, *, hidden_size, num_layers, output_activation=None):
    """Pure-JAX reference replicating torch.nn.LSTM semantics (gate order i,f,g,o)."""
    B, T, _ = x.shape
    H = hidden_size
    layer_in = x.astype(jnp.float32)
    h_last = None
    for l in range(num_layers):
        w_ih, w_hh, b_ih, b_hh = params[f'layer{l}']
        h = jnp.zeros((B, H), jnp.float32)
        c = jnp.zeros((B, H), jnp.float32)
        outs = []
        for t in range(T):
            g = layer_in[:, t, :] @ w_ih.T + h @ w_hh.T + b_ih + b_hh
            i_g = jax.nn.sigmoid(g[:, 0 * H:1 * H])
            f_g = jax.nn.sigmoid(g[:, 1 * H:2 * H])
            g_g = jnp.tanh(g[:, 2 * H:3 * H])
            o_g = jax.nn.sigmoid(g[:, 3 * H:4 * H])
            c = f_g * c + i_g * g_g
            h = o_g * jnp.tanh(c)
            outs.append(h)
        layer_in = jnp.stack(outs, axis=1)
        h_last = h
    out = h_last @ params['fc_w'].T + params['fc_b']
    if output_activation == 'sigmoid':
        out = jax.nn.sigmoid(out)
    return out


def init_params(key, input_size, hidden_size, num_layers):
    """Deterministic uniform(-1/sqrt(H), 1/sqrt(H)) init, matching nn.LSTM's scheme."""
    H = hidden_size
    bound = 1.0 / jnp.sqrt(jnp.float32(H))
    params = {}
    for l in range(num_layers):
        in_feat = input_size if l == 0 else H
        key, k1, k2, k3, k4 = jax.random.split(key, 5)
        params[f'layer{l}'] = (
            jax.random.uniform(k1, (4 * H, in_feat), jnp.float32, -bound, bound),  # weight_ih_l
            jax.random.uniform(k2, (4 * H, H), jnp.float32, -bound, bound),        # weight_hh_l
            jax.random.uniform(k3, (4 * H,), jnp.float32, -bound, bound),          # bias_ih_l
            jax.random.uniform(k4, (4 * H,), jnp.float32, -bound, bound),          # bias_hh_l
        )
    key, k1, k2 = jax.random.split(key, 3)
    fc_bound = 1.0 / jnp.sqrt(jnp.float32(H))
    params['fc_w'] = jax.random.uniform(k1, (1, H), jnp.float32, -fc_bound, fc_bound)
    params['fc_b'] = jax.random.uniform(k2, (1,), jnp.float32, -fc_bound, fc_bound)
    return params


if __name__ == "__main__":
    B, T, INPUT, HIDDEN, LAYERS = 2, 8, 8, 32, 2
    ACT = 'sigmoid'

    key = jax.random.PRNGKey(0)
    key, xkey = jax.random.split(key)
    x = jax.random.normal(xkey, (B, T, INPUT), jnp.float32)
    params = init_params(key, INPUT, HIDDEN, LAYERS)

    out = lstm_model_forward(x, params, hidden_size=HIDDEN, num_layers=LAYERS,
                             output_activation=ACT)
    out = jax.block_until_ready(out)

    ref = _reference_forward(x, params, hidden_size=HIDDEN, num_layers=LAYERS,
                             output_activation=ACT)
    assert out.shape == (B, 1)
    assert jnp.allclose(out, ref, atol=1e-5, rtol=1e-5), (out, ref)

    print("KERNEL_OK")
</pallas_src>

<mosaic_0001>
module attributes {stable_mosaic.version = 11 : i64} {
  func.func @_lstm_kernel(%arg0: memref<64x8xf32, #tpu.memory_space<vmem>>, %arg1: memref<8x128xf32, #tpu.memory_space<vmem>>, %arg2: memref<32x128xf32, #tpu.memory_space<vmem>>, %arg3: memref<1x128xf32, #tpu.memory_space<vmem>>, %arg4: memref<32x128xf32, #tpu.memory_space<vmem>>, %arg5: memref<32x128xf32, #tpu.memory_space<vmem>>, %arg6: memref<1x128xf32, #tpu.memory_space<vmem>>, %arg7: memref<1x32xf32, #tpu.memory_space<vmem>>, %arg8: memref<1x1xf32, #tpu.memory_space<vmem>>, %arg9: memref<8x1xf32, #tpu.memory_space<vmem>>, %arg10: memref<64x32xf32, #tpu.memory_space<vmem>>, %arg11: memref<64x128xf32, #tpu.memory_space<vmem>>) attributes {dimension_semantics = [], scalar_prefetch = 0 : i64, scratch_operands = 2 : i64, tpu.core_type = #tpu.core_type<tc>} {
    %c0 = arith.constant 0 : index
    %c0_0 = arith.constant 0 : index
    %0 = vector.load %arg1[%c0, %c0_0] : memref<8x128xf32, #tpu.memory_space<vmem>>, vector<8x128xf32>
    %c0_1 = arith.constant 0 : index
    %c0_2 = arith.constant 0 : index
    %1 = vector.load %arg2[%c0_1, %c0_2] : memref<32x128xf32, #tpu.memory_space<vmem>>, vector<32x128xf32>
    %c0_3 = arith.constant 0 : index
    %c0_4 = arith.constant 0 : index
    %2 = vector.load %arg3[%c0_3, %c0_4] : memref<1x128xf32, #tpu.memory_space<vmem>>, vector<1x128xf32>
    %c0_5 = arith.constant 0 : index
    %c0_6 = arith.constant 0 : index
    %3 = vector.load %arg0[%c0_5, %c0_6] : memref<64x8xf32, #tpu.memory_space<vmem>>, vector<64x8xf32>
    %cst = arith.constant dense<0.000000e+00> : vector<64x128xf32>
    %4 = tpu.matmul %3, %0, %cst {dimension_numbers = #tpu.dot_dimension_numbers<[1], [0], [0], [1], [0, 0, 1, 1], [], []>} : vector<64x8xf32>, vector<8x128xf32>, vector<64x128xf32> -> vector<64x128xf32>
    %5 = vector.broadcast %2 : vector<1x128xf32> to vector<64x128xf32>
    %6 = arith.addf %4, %5 : vector<64x128xf32>
    %c0_7 = arith.constant 0 : index
    %c0_8 = arith.constant 0 : index
    %7 = vector.load %arg11[%c0_7, %c0_8] : memref<64x128xf32, #tpu.memory_space<vmem>>, vector<64x128xf32>
    tpu.vector_store %arg11[%c0_7, %c0_8], %6 {strides = array<i32>} : memref<64x128xf32, #tpu.memory_space<vmem>>, vector<64x128xf32>,
    %cst_9 = arith.constant 0.000000e+00 : f32
    %8 = vector.broadcast %cst_9 : f32 to vector<8x32xf32>
    %cst_10 = arith.constant 0.000000e+00 : f32
    %9 = vector.broadcast %cst_10 : f32 to vector<8x32xf32>
    %c0_i32 = arith.constant 0 : i32
    %c8_i32 = arith.constant 8 : i32
    %10 = arith.muli %c0_i32, %c8_i32 : i32
    %11 = tpu.assume_multiple %10, 8 : i32
    %12 = arith.index_cast %11 : i32 to index
    %c0_11 = arith.constant 0 : index
    %13 = vector.load %arg11[%12, %c0_11] : memref<64x128xf32, #tpu.memory_space<vmem>>, vector<8x128xf32>
    %cst_12 = arith.constant dense<0.000000e+00> : vector<8x128xf32>
    %14 = tpu.matmul %8, %1, %cst_12 {dimension_numbers = #tpu.dot_dimension_numbers<[1], [0], [0], [1], [0, 0, 1, 1], [], []>} : vector<8x32xf32>, vector<32x128xf32>, vector<8x128xf32> -> vector<8x128xf32>
    %15 = arith.addf %13, %14 : vector<8x128xf32>
    %16 = vector.extract_strided_slice %15 {offsets = [0, 0], sizes = [8, 96], strides = [1, 1]} : vector<8x128xf32> to vector<8x96xf32>
    %17 = arith.negf %16 : vector<8x96xf32>
    %18 = math.exp %17 : vector<8x96xf32>
    %cst_13 = arith.constant 1.000000e+00 : f32
    %19 = vector.broadcast %cst_13 : f32 to vector<8x96xf32>
    %20 = arith.addf %19, %18 : vector<8x96xf32>
    %21 = arith.divf %19, %20 : vector<8x96xf32>
    %22 = vector.extract_strided_slice %15 {offsets = [0, 96], sizes = [8, 32], strides = [1, 1]} : vector<8x128xf32> to vector<8x32xf32>
    %23 = math.tanh %22 : vector<8x32xf32>
    %24 = vector.extract_strided_slice %21 {offsets = [0, 0], sizes = [8, 32], strides = [1, 1]} : vector<8x96xf32> to vector<8x32xf32>
    %25 = vector.extract_strided_slice %21 {offsets = [0, 32], sizes = [8, 32], strides = [1, 1]} : vector<8x96xf32> to vector<8x32xf32>
    %26 = vector.extract_strided_slice %21 {offsets = [0, 64], sizes = [8, 32], strides = [1, 1]} : vector<8x96xf32> to vector<8x32xf32>
    %27 = arith.mulf %25, %9 : vector<8x32xf32>
    %28 = arith.mulf %24, %23 : vector<8x32xf32>
    %29 = arith.addf %27, %28 : vector<8x32xf32>
    %30 = math.tanh %29 : vector<8x32xf32>
    %31 = arith.mulf %26, %30 : vector<8x32xf32>
    %32 = arith.index_cast %11 : i32 to index
    %c0_14 = arith.constant 0 : index
    %33 = vector.load %arg10[%32, %c0_14] : memref<64x32xf32, #tpu.memory_space<vmem>>, vector<8x32xf32>
    tpu.vector_store %arg10[%32, %c0_14], %31 {strides = array<i32>} : memref<64x32xf32, #tpu.memory_space<vmem>>, vector<8x32xf32>,
    %c1_i32 = arith.constant 1 : i32
    %c8_i32_15 = arith.constant 8 : i32
    %34 = arith.muli %c1_i32, %c8_i32_15 : i32
    %35 = tpu.assume_multiple %34, 8 : i32
    %36 = arith.index_cast %35 : i32 to index
    %c0_16 = arith.constant 0 : index
    %37 = vector.load %arg11[%36, %c0_16] : memref<64x128xf32, #tpu.memory_space<vmem>>, vector<8x128xf32>
    %cst_17 = arith.constant dense<0.000000e+00> : vector<8x128xf32>
    %38 = tpu.matmul %31, %1, %cst_17 {dimension_numbers = #tpu.dot_dimension_numbers<[1], [0], [0], [1], [0, 0, 1, 1], [], []>} : vector<8x32xf32>, vector<32x128xf32>, vector<8x128xf32> -> vector<8x128xf32>
    %39 = arith.addf %37, %38 : vector<8x128xf32>
    %40 = vector.extract_strided_slice %39 {offsets = [0, 0], sizes = [8, 96], strides = [1, 1]} : vector<8x128xf32> to vector<8x96xf32>
    %41 = arith.negf %40 : vector<8x96xf32>
    %42 = math.exp %41 : vector<8x96xf32>
    %cst_18 = arith.constant 1.000000e+00 : f32
    %43 = vector.broadcast %cst_18 : f32 to vector<8x96xf32>
    %44 = arith.addf %43, %42 : vector<8x96xf32>
    %45 = arith.divf %43, %44 : vector<8x96xf32>
    %46 = vector.extract_strided_slice %39 {offsets = [0, 96], sizes = [8, 32], strides = [1, 1]} : vector<8x128xf32> to vector<8x32xf32>
    %47 = math.tanh %46 : vector<8x32xf32>
    %48 = vector.extract_strided_slice %45 {offsets = [0, 0], sizes = [8, 32], strides = [1, 1]} : vector<8x96xf32> to vector<8x32xf32>
    %49 = vector.extract_strided_slice %45 {offsets = [0, 32], sizes = [8, 32], strides = [1, 1]} : vector<8x96xf32> to vector<8x32xf32>
    %50 = vector.extract_strided_slice %45 {offsets = [0, 64], sizes = [8, 32], strides = [1, 1]} : vector<8x96xf32> to vector<8x32xf32>
    %51 = arith.mulf %49, %29 : vector<8x32xf32>
    %52 = arith.mulf %48, %47 : vector<8x32xf32>
    %53 = arith.addf %51, %52 : vector<8x32xf32>
    %54 = math.tanh %53 : vector<8x32xf32>
    %55 = arith.mulf %50, %54 : vector<8x32xf32>
    %56 = arith.index_cast %35 : i32 to index
    %c0_19 = arith.constant 0 : index
    %57 = vector.load %arg10[%56, %c0_19] : memref<64x32xf32, #tpu.memory_space<vmem>>, vector<8x32xf32>
    tpu.vector_store %arg10[%56, %c0_19], %55 {strides = array<i32>} : memref<64x32xf32, #tpu.memory_space<vmem>>, vector<8x32xf32>,
    %c2_i32 = arith.constant 2 : i32
    %c8_i32_20 = arith.constant 8 : i32
    %58 = arith.muli %c2_i32, %c8_i32_20 : i32
    %59 = tpu.assume_multiple %58, 8 : i32
    %60 = arith.index_cast %59 : i32 to index
    %c0_21 = arith.constant 0 : index
    %61 = vector.load %arg11[%60, %c0_21] : memref<64x128xf32, #tpu.memory_space<vmem>>, vector<8x128xf32>
    %cst_22 = arith.constant dense<0.000000e+00> : vector<8x128xf32>
    %62 = tpu.matmul %55, %1, %cst_22 {dimension_numbers = #tpu.dot_dimension_numbers<[1], [0], [0], [1], [0, 0, 1, 1], [], []>} : vector<8x32xf32>, vector<32x128xf32>, vector<8x128xf32> -> vector<8x128xf32>
    %63 = arith.addf %61, %62 : vector<8x128xf32>
    %64 = vector.extract_strided_slice %63 {offsets = [0, 0], sizes = [8, 96], strides = [1, 1]} : vector<8x128xf32> to vector<8x96xf32>
    %65 = arith.negf %64 : vector<8x96xf32>
    %66 = math.exp %65 : vector<8x96xf32>
    %cst_23 = arith.constant 1.000000e+00 : f32
    %67 = vector.broadcast %cst_23 : f32 to vector<8x96xf32>
    %68 = arith.addf %67, %66 : vector<8x96xf32>
    %69 = arith.divf %67, %68 : vector<8x96xf32>
    %70 = vector.extract_strided_slice %63 {offsets = [0, 96], sizes = [8, 32], strides = [1, 1]} : vector<8x128xf32> to vector<8x32xf32>
    %71 = math.tanh %70 : vector<8x32xf32>
    %72 = vector.extract_strided_slice %69 {offsets = [0, 0], sizes = [8, 32], strides = [1, 1]} : vector<8x96xf32> to vector<8x32xf32>
    %73 = vector.extract_strided_slice %69 {offsets = [0, 32], sizes = [8, 32], strides = [1, 1]} : vector<8x96xf32> to vector<8x32xf32>
    %74 = vector.extract_strided_slice %69 {offsets = [0, 64], sizes = [8, 32], strides = [1, 1]} : vector<8x96xf32> to vector<8x32xf32>
    %75 = arith.mulf %73, %53 : vector<8x32xf32>
    %76 = arith.mulf %72, %71 : vector<8x32xf32>
    %77 = arith.addf %75, %76 : vector<8x32xf32>
    %78 = math.tanh %77 : vector<8x32xf32>
    %79 = arith.mulf %74, %78 : vector<8x32xf32>
    %80 = arith.index_cast %59 : i32 to index
    %c0_24 = arith.constant 0 : index
    %81 = vector.load %arg10[%80, %c0_24] : memref<64x32xf32, #tpu.memory_space<vmem>>, vector<8x32xf32>
    tpu.vector_store %arg10[%80, %c0_24], %79 {strides = array<i32>} : memref<64x32xf32, #tpu.memory_space<vmem>>, vector<8x32xf32>,
    %c3_i32 = arith.constant 3 : i32
    %c8_i32_25 = arith.constant 8 : i32
    %82 = arith.muli %c3_i32, %c8_i32_25 : i32
    %83 = tpu.assume_multiple %82, 8 : i32
    %84 = arith.index_cast %83 : i32 to index
    %c0_26 = arith.constant 0 : index
    %85 = vector.load %arg11[%84, %c0_26] : memref<64x128xf32, #tpu.memory_space<vmem>>, vector<8x128xf32>
    %cst_27 = arith.constant dense<0.000000e+00> : vector<8x128xf32>
    %86 = tpu.matmul %79, %1, %cst_27 {dimension_numbers = #tpu.dot_dimension_numbers<[1], [0], [0], [1], [0, 0, 1, 1], [], []>} : vector<8x32xf32>, vector<32x128xf32>, vector<8x128xf32> -> vector<8x128xf32>
    %87 = arith.addf %85, %86 : vector<8x128xf32>
    %88 = vector.extract_strided_slice %87 {offsets = [0, 0], sizes = [8, 96], strides = [1, 1]} : vector<8x128xf32> to vector<8x96xf32>
    %89 = arith.negf %88 : vector<8x96xf32>
    %90 = math.exp %89 : vector<8x96xf32>
    %cst_28 = arith.constant 1.000000e+00 : f32
    %91 = vector.broadcast %cst_28 : f32 to vector<8x96xf32>
    %92 = arith.addf %91, %90 : vector<8x96xf32>
    %93 = arith.divf %91, %92 : vector<8x96xf32>
    %94 = vector.extract_strided_slice %87 {offsets = [0, 96], sizes = [8, 32], strides = [1, 1]} : vector<8x128xf32> to vector<8x32xf32>
    %95 = math.tanh %94 : vector<8x32xf32>
    %96 = vector.extract_strided_slice %93 {offsets = [0, 0], sizes = [8, 32], strides = [1, 1]} : vector<8x96xf32> to vector<8x32xf32>
    %97 = vector.extract_strided_slice %93 {offsets = [0, 32], sizes = [8, 32], strides = [1, 1]} : vector<8x96xf32> to vector<8x32xf32>
    %98 = vector.extract_strided_slice %93 {offsets = [0, 64], sizes = [8, 32], strides = [1, 1]} : vector<8x96xf32> to vector<8x32xf32>
    %99 = arith.mulf %97, %77 : vector<8x32xf32>
    %100 = arith.mulf %96, %95 : vector<8x32xf32>
    %101 = arith.addf %99, %100 : vector<8x32xf32>
    %102 = math.tanh %101 : vector<8x32xf32>
    %103 = arith.mulf %98, %102 : vector<8x32xf32>
    %104 = arith.index_cast %83 : i32 to index
    %c0_29 = arith.constant 0 : index
    %105 = vector.load %arg10[%104, %c0_29] : memref<64x32xf32, #tpu.memory_space<vmem>>, vector<8x32xf32>
    tpu.vector_store %arg10[%104, %c0_29], %103 {strides = array<i32>} : memref<64x32xf32, #tpu.memory_space<vmem>>, vector<8x32xf32>,
    %c4_i32 = arith.constant 4 : i32
    %c8_i32_30 = arith.constant 8 : i32
    %106 = arith.muli %c4_i32, %c8_i32_30 : i32
    %107 = tpu.assume_multiple %106, 8 : i32
    %108 = arith.index_cast %107 : i32 to index
    %c0_31 = arith.constant 0 : index
    %109 = vector.load %arg11[%108, %c0_31] : memref<64x128xf32, #tpu.memory_space<vmem>>, vector<8x128xf32>
    %cst_32 = arith.constant dense<0.000000e+00> : vector<8x128xf32>
    %110 = tpu.matmul %103, %1, %cst_32 {dimension_numbers = #tpu.dot_dimension_numbers<[1], [0], [0], [1], [0, 0, 1, 1], [], []>} : vector<8x32xf32>, vector<32x128xf32>, vector<8x128xf32> -> vector<8x128xf32>
    %111 = arith.addf %109, %110 : vector<8x128xf32>
    %112 = vector.extract_strided_slice %111 {offsets = [0, 0], sizes = [8, 96], strides = [1, 1]} : vector<8x128xf32> to vector<8x96xf32>
    %113 = arith.negf %112 : vector<8x96xf32>
    %114 = math.exp %113 : vector<8x96xf32>
    %cst_33 = arith.constant 1.000000e+00 : f32
    %115 = vector.broadcast %cst_33 : f32 to vector<8x96xf32>
    %116 = arith.addf %115, %114 : vector<8x96xf32>
    %117 = arith.divf %115, %116 : vector<8x96xf32>
    %118 = vector.extract_strided_slice %111 {offsets = [0, 96], sizes = [8, 32], strides = [1, 1]} : vector<8x128xf32> to vector<8x32xf32>
    %119 = math.tanh %118 : vector<8x32xf32>
    %120 = vector.extract_strided_slice %117 {offsets = [0, 0], sizes = [8, 32], strides = [1, 1]} : vector<8x96xf32> to vector<8x32xf32>
    %121 = vector.extract_strided_slice %117 {offsets = [0, 32], sizes = [8, 32], strides = [1, 1]} : vector<8x96xf32> to vector<8x32xf32>
    %122 = vector.extract_strided_slice %117 {offsets = [0, 64], sizes = [8, 32], strides = [1, 1]} : vector<8x96xf32> to vector<8x32xf32>
    %123 = arith.mulf %121, %101 : vector<8x32xf32>
    %124 = arith.mulf %120, %119 : vector<8x32xf32>
    %125 = arith.addf %123, %124 : vector<8x32xf32>
    %126 = math.tanh %125 : vector<8x32xf32>
    %127 = arith.mulf %122, %126 : vector<8x32xf32>
    %128 = arith.index_cast %107 : i32 to index
    %c0_34 = arith.constant 0 : index
    %129 = vector.load %arg10[%128, %c0_34] : memref<64x32xf32, #tpu.memory_space<vmem>>, vector<8x32xf32>
    tpu.vector_store %arg10[%128, %c0_34], %127 {strides = array<i32>} : memref<64x32xf32, #tpu.memory_space<vmem>>, vector<8x32xf32>,
    %c5_i32 = arith.constant 5 : i32
    %c8_i32_35 = arith.constant 8 : i32
    %130 = arith.muli %c5_i32, %c8_i32_35 : i32
    %131 = tpu.assume_multiple %130, 8 : i32
    %132 = arith.index_cast %131 : i32 to index
    %c0_36 = arith.constant 0 : index
    %133 = vector.load %arg11[%132, %c0_36] : memref<64x128xf32, #tpu.memory_space<vmem>>, vector<8x128xf32>
    %cst_37 = arith.constant dense<0.000000e+00> : vector<8x128xf32>
    %134 = tpu.matmul %127, %1, %cst_37 {dimension_numbers = #tpu.dot_dimension_numbers<[1], [0], [0], [1], [0, 0, 1, 1], [], []>} : vector<8x32xf32>, vector<32x128xf32>, vector<8x128xf32> -> vector<8x128xf32>
    %135 = arith.addf %133, %134 : vector<8x128xf32>
    %136 = vector.extract_strided_slice %135 {offsets = [0, 0], sizes = [8, 96], strides = [1, 1]} : vector<8x128xf32> to vector<8x96xf32>
    %137 = arith.negf %136 : vector<8x96xf32>
    %138 = math.exp %137 : vector<8x96xf32>
    %cst_38 = arith.constant 1.000000e+00 : f32
    %139 = vector.broadcast %cst_38 : f32 to vector<8x96xf32>
    %140 = arith.addf %139, %138 : vector<8x96xf32>
    %141 = arith.divf %139, %140 : vector<8x96xf32>
    %142 = vector.extract_strided_slice %135 {offsets = [0, 96], sizes = [8, 32], strides = [1, 1]} : vector<8x128xf32> to vector<8x32xf32>
    %143 = math.tanh %142 : vector<8x32xf32>
    %144 = vector.extract_strided_slice %141 {offsets = [0, 0], sizes = [8, 32], strides = [1, 1]} : vector<8x96xf32> to vector<8x32xf32>
    %145 = vector.extract_strided_slice %141 {offsets = [0, 32], sizes = [8, 32], strides = [1, 1]} : vector<8x96xf32> to vector<8x32xf32>
    %146 = vector.extract_strided_slice %141 {offsets = [0, 64], sizes = [8, 32], strides = [1, 1]} : vector<8x96xf32> to vector<8x32xf32>
    %147 = arith.mulf %145, %125 : vector<8x32xf32>
    %148 = arith.mulf %144, %143 : vector<8x32xf32>
    %149 = arith.addf %147, %148 : vector<8x32xf32>
    %150 = math.tanh %149 : vector<8x32xf32>
    %151 = arith.mulf %146, %150 : vector<8x32xf32>
    %152 = arith.index_cast %131 : i32 to index
    %c0_39 = arith.constant 0 : index
    %153 = vector.load %arg10[%152, %c0_39] : memref<64x32xf32, #tpu.memory_space<vmem>>, vector<8x32xf32>
    tpu.vector_store %arg10[%152, %c0_39], %151 {strides = array<i32>} : memref<64x32xf32, #tpu.memory_space<vmem>>, vector<8x32xf32>,
    %c6_i32 = arith.constant 6 : i32
    %c8_i32_40 = arith.constant 8 : i32
    %154 = arith.muli %c6_i32, %c8_i32_40 : i32
    %155 = tpu.assume_multiple %154, 8 : i32
    %156 = arith.index_cast %155 : i32 to index
    %c0_41 = arith.constant 0 : index
    %157 = vector.load %arg11[%156, %c0_41] : memref<64x128xf32, #tpu.memory_space<vmem>>, vector<8x128xf32>
    %cst_42 = arith.constant dense<0.000000e+00> : vector<8x128xf32>
    %158 = tpu.matmul %151, %1, %cst_42 {dimension_numbers = #tpu.dot_dimension_numbers<[1], [0], [0], [1], [0, 0, 1, 1], [], []>} : vector<8x32xf32>, vector<32x128xf32>, vector<8x128xf32> -> vector<8x128xf32>
    %159 = arith.addf %157, %158 : vector<8x128xf32>
    %160 = vector.extract_strided_slice %159 {offsets = [0, 0], sizes = [8, 96], strides = [1, 1]} : vector<8x128xf32> to vector<8x96xf32>
    %161 = arith.negf %160 : vector<8x96xf32>
    %162 = math.exp %161 : vector<8x96xf32>
    %cst_43 = arith.constant 1.000000e+00 : f32
    %163 = vector.broadcast %cst_43 : f32 to vector<8x96xf32>
    %164 = arith.addf %163, %162 : vector<8x96xf32>
    %165 = arith.divf %163, %164 : vector<8x96xf32>
    %166 = vector.extract_strided_slice %159 {offsets = [0, 96], sizes = [8, 32], strides = [1, 1]} : vector<8x128xf32> to vector<8x32xf32>
    %167 = math.tanh %166 : vector<8x32xf32>
    %168 = vector.extract_strided_slice %165 {offsets = [0, 0], sizes = [8, 32], strides = [1, 1]} : vector<8x96xf32> to vector<8x32xf32>
    %169 = vector.extract_strided_slice %165 {offsets = [0, 32], sizes = [8, 32], strides = [1, 1]} : vector<8x96xf32> to vector<8x32xf32>
    %170 = vector.extract_strided_slice %165 {offsets = [0, 64], sizes = [8, 32], strides = [1, 1]} : vector<8x96xf32> to vector<8x32xf32>
    %171 = arith.mulf %169, %149 : vector<8x32xf32>
    %172 = arith.mulf %168, %167 : vector<8x32xf32>
    %173 = arith.addf %171, %172 : vector<8x32xf32>
    %174 = math.tanh %173 : vector<8x32xf32>
    %175 = arith.mulf %170, %174 : vector<8x32xf32>
    %176 = arith.index_cast %155 : i32 to index
    %c0_44 = arith.constant 0 : index
    %177 = vector.load %arg10[%176, %c0_44] : memref<64x32xf32, #tpu.memory_space<vmem>>, vector<8x32xf32>
    tpu.vector_store %arg10[%176, %c0_44], %175 {strides = array<i32>} : memref<64x32xf32, #tpu.memory_space<vmem>>, vector<8x32xf32>,
    %c7_i32 = arith.constant 7 : i32
    %c8_i32_45 = arith.constant 8 : i32
    %178 = arith.muli %c7_i32, %c8_i32_45 : i32
    %179 = tpu.assume_multiple %178, 8 : i32
    %180 = arith.index_cast %179 : i32 to index
    %c0_46 = arith.constant 0 : index
    %181 = vector.load %arg11[%180, %c0_46] : memref<64x128xf32, #tpu.memory_space<vmem>>, vector<8x128xf32>
    %cst_47 = arith.constant dense<0.000000e+00> : vector<8x128xf32>
    %182 = tpu.matmul %175, %1, %cst_47 {dimension_numbers = #tpu.dot_dimension_numbers<[1], [0], [0], [1], [0, 0, 1, 1], [], []>} : vector<8x32xf32>, vector<32x128xf32>, vector<8x128xf32> -> vector<8x128xf32>
    %183 = arith.addf %181, %182 : vector<8x128xf32>
    %184 = vector.extract_strided_slice %183 {offsets = [0, 0], sizes = [8, 96], strides = [1, 1]} : vector<8x128xf32> to vector<8x96xf32>
    %185 = arith.negf %184 : vector<8x96xf32>
    %186 = math.exp %185 : vector<8x96xf32>
    %cst_48 = arith.constant 1.000000e+00 : f32
    %187 = vector.broadcast %cst_48 : f32 to vector<8x96xf32>
    %188 = arith.addf %187, %186 : vector<8x96xf32>
    %189 = arith.divf %187, %188 : vector<8x96xf32>
    %190 = vector.extract_strided_slice %183 {offsets = [0, 96], sizes = [8, 32], strides = [1, 1]} : vector<8x128xf32> to vector<8x32xf32>
    %191 = math.tanh %190 : vector<8x32xf32>
    %192 = vector.extract_strided_slice %189 {offsets = [0, 0], sizes = [8, 32], strides = [1, 1]} : vector<8x96xf32> to vector<8x32xf32>
    %193 = vector.extract_strided_slice %189 {offsets = [0, 32], sizes = [8, 32], strides = [1, 1]} : vector<8x96xf32> to vector<8x32xf32>
    %194 = vector.extract_strided_slice %189 {offsets = [0, 64], sizes = [8, 32], strides = [1, 1]} : vector<8x96xf32> to vector<8x32xf32>
    %195 = arith.mulf %193, %173 : vector<8x32xf32>
    %196 = arith.mulf %192, %191 : vector<8x32xf32>
    %197 = arith.addf %195, %196 : vector<8x32xf32>
    %198 = math.tanh %197 : vector<8x32xf32>
    %199 = arith.mulf %194, %198 : vector<8x32xf32>
    %200 = arith.index_cast %179 : i32 to index
    %c0_49 = arith.constant 0 : index
    %201 = vector.load %arg10[%200, %c0_49] : memref<64x32xf32, #tpu.memory_space<vmem>>, vector<8x32xf32>
    tpu.vector_store %arg10[%200, %c0_49], %199 {strides = array<i32>} : memref<64x32xf32, #tpu.memory_space<vmem>>, vector<8x32xf32>,
    %c8_i32_50 = arith.constant 8 : i32
    %c0_51 = arith.constant 0 : index
    %c0_52 = arith.constant 0 : index
    %202 = vector.load %arg4[%c0_51, %c0_52] : memref<32x128xf32, #tpu.memory_space<vmem>>, vector<32x128xf32>
    %c0_53 = arith.constant 0 : index
    %c0_54 = arith.constant 0 : index
    %203 = vector.load %arg5[%c0_53, %c0_54] : memref<32x128xf32, #tpu.memory_space<vmem>>, vector<32x128xf32>
    %c0_55 = arith.constant 0 : index
    %c0_56 = arith.constant 0 : index
    %204 = vector.load %arg6[%c0_55, %c0_56] : memref<1x128xf32, #tpu.memory_space<vmem>>, vector<1x128xf32>
    %c0_57 = arith.constant 0 : index
    %c0_58 = arith.constant 0 : index
    %205 = vector.load %arg10[%c0_57, %c0_58] : memref<64x32xf32, #tpu.memory_space<vmem>>, vector<64x32xf32>
    %cst_59 = arith.constant dense<0.000000e+00> : vector<64x128xf32>
    %206 = tpu.matmul %205, %202, %cst_59 {dimension_numbers = #tpu.dot_dimension_numbers<[1], [0], [0], [1], [0, 0, 1, 1], [], []>} : vector<64x32xf32>, vector<32x128xf32>, vector<64x128xf32> -> vector<64x128xf32>
    %207 = vector.broadcast %204 : vector<1x128xf32> to vector<64x128xf32>
    %208 = arith.addf %206, %207 : vector<64x128xf32>
    %c0_60 = arith.constant 0 : index
    %c0_61 = arith.constant 0 : index
    %209 = vector.load %arg11[%c0_60, %c0_61] : memref<64x128xf32, #tpu.memory_space<vmem>>, vector<64x128xf32>
    tpu.vector_store %arg11[%c0_60, %c0_61], %208 {strides = array<i32>} : memref<64x128xf32, #tpu.memory_space<vmem>>, vector<64x128xf32>,
    %cst_62 = arith.constant 0.000000e+00 : f32
    %210 = vector.broadcast %cst_62 : f32 to vector<8x32xf32>
    %cst_63 = arith.constant 0.000000e+00 : f32
    %211 = vector.broadcast %cst_63 : f32 to vector<8x32xf32>
    %c0_i32_64 = arith.constant 0 : i32
    %c8_i32_65 = arith.constant 8 : i32
    %212 = arith.muli %c0_i32_64, %c8_i32_65 : i32
    %213 = tpu.assume_multiple %212, 8 : i32
    %214 = arith.index_cast %213 : i32 to index
    %c0_66 = arith.constant 0 : index
    %215 = vector.load %arg11[%214, %c0_66] : memref<64x128xf32, #tpu.memory_space<vmem>>, vector<8x128xf32>
    %cst_67 = arith.constant dense<0.000000e+00> : vector<8x128xf32>
    %216 = tpu.matmul %210, %203, %cst_67 {dimension_numbers = #tpu.dot_dimension_numbers<[1], [0], [0], [1], [0, 0, 1, 1], [], []>} : vector<8x32xf32>, vector<32x128xf32>, vector<8x128xf32> -> vector<8x128xf32>
    %217 = arith.addf %215, %216 : vector<8x128xf32>
    %218 = vector.extract_strided_slice %217 {offsets = [0, 0], sizes = [8, 96], strides = [1, 1]} : vector<8x128xf32> to vector<8x96xf32>
    %219 = arith.negf %218 : vector<8x96xf32>
    %220 = math.exp %219 : vector<8x96xf32>
    %cst_68 = arith.constant 1.000000e+00 : f32
    %221 = vector.broadcast %cst_68 : f32 to vector<8x96xf32>
    %222 = arith.addf %221, %220 : vector<8x96xf32>
    %223 = arith.divf %221, %222 : vector<8x96xf32>
    %224 = vector.extract_strided_slice %217 {offsets = [0, 96], sizes = [8, 32], strides = [1, 1]} : vector<8x128xf32> to vector<8x32xf32>
    %225 = math.tanh %224 : vector<8x32xf32>
    %226 = vector.extract_strided_slice %223 {offsets = [0, 0], sizes = [8, 32], strides = [1, 1]} : vector<8x96xf32> to vector<8x32xf32>
    %227 = vector.extract_strided_slice %223 {offsets = [0, 32], sizes = [8, 32], strides = [1, 1]} : vector<8x96xf32> to vector<8x32xf32>
    %228 = vector.extract_strided_slice %223 {offsets = [0, 64], sizes = [8, 32], strides = [1, 1]} : vector<8x96xf32> to vector<8x32xf32>
    %229 = arith.mulf %227, %211 : vector<8x32xf32>
    %230 = arith.mulf %226, %225 : vector<8x32xf32>
    %231 = arith.addf %229, %230 : vector<8x32xf32>
    %232 = math.tanh %231 : vector<8x32xf32>
    %233 = arith.mulf %228, %232 : vector<8x32xf32>
    %c1_i32_69 = arith.constant 1 : i32
    %c8_i32_70 = arith.constant 8 : i32
    %234 = arith.muli %c1_i32_69, %c8_i32_70 : i32
    %235 = tpu.assume_multiple %234, 8 : i32
    %236 = arith.index_cast %235 : i32 to index
    %c0_71 = arith.constant 0 : index
    %237 = vector.load %arg11[%236, %c0_71] : memref<64x128xf32, #tpu.memory_space<vmem>>, vector<8x128xf32>
    %cst_72 = arith.constant dense<0.000000e+00> : vector<8x128xf32>
    %238 = tpu.matmul %233, %203, %cst_72 {dimension_numbers = #tpu.dot_dimension_numbers<[1], [0], [0], [1], [0, 0, 1, 1], [], []>} : vector<8x32xf32>, vector<32x128xf32>, vector<8x128xf32> -> vector<8x128xf32>
    %239 = arith.addf %237, %238 : vector<8x128xf32>
    %240 = vector.extract_strided_slice %239 {offsets = [0, 0], sizes = [8, 96], strides = [1, 1]} : vector<8x128xf32> to vector<8x96xf32>
    %241 = arith.negf %240 : vector<8x96xf32>
    %242 = math.exp %241 : vector<8x96xf32>
    %cst_73 = arith.constant 1.000000e+00 : f32
    %243 = vector.broadcast %cst_73 : f32 to vector<8x96xf32>
    %244 = arith.addf %243, %242 : vector<8x96xf32>
    %245 = arith.divf %243, %244 : vector<8x96xf32>
    %246 = vector.extract_strided_slice %239 {offsets = [0, 96], sizes = [8, 32], strides = [1, 1]} : vector<8x128xf32> to vector<8x32xf32>
    %247 = math.tanh %246 : vector<8x32xf32>
    %248 = vector.extract_strided_slice %245 {offsets = [0, 0], sizes = [8, 32], strides = [1, 1]} : vector<8x96xf32> to vector<8x32xf32>
    %249 = vector.extract_strided_slice %245 {offsets = [0, 32], sizes = [8, 32], strides = [1, 1]} : vector<8x96xf32> to vector<8x32xf32>
    %250 = vector.extract_strided_slice %245 {offsets = [0, 64], sizes = [8, 32], strides = [1, 1]} : vector<8x96xf32> to vector<8x32xf32>
    %251 = arith.mulf %249, %231 : vector<8x32xf32>
    %252 = arith.mulf %248, %247 : vector<8x32xf32>
    %253 = arith.addf %251, %252 : vector<8x32xf32>
    %254 = math.tanh %253 : vector<8x32xf32>
    %255 = arith.mulf %250, %254 : vector<8x32xf32>
    %c2_i32_74 = arith.constant 2 : i32
    %c8_i32_75 = arith.constant 8 : i32
    %256 = arith.muli %c2_i32_74, %c8_i32_75 : i32
    %257 = tpu.assume_multiple %256, 8 : i32
    %258 = arith.index_cast %257 : i32 to index
    %c0_76 = arith.constant 0 : index
    %259 = vector.load %arg11[%258, %c0_76] : memref<64x128xf32, #tpu.memory_space<vmem>>, vector<8x128xf32>
    %cst_77 = arith.constant dense<0.000000e+00> : vector<8x128xf32>
    %260 = tpu.matmul %255, %203, %cst_77 {dimension_numbers = #tpu.dot_dimension_numbers<[1], [0], [0], [1], [0, 0, 1, 1], [], []>} : vector<8x32xf32>, vector<32x128xf32>, vector<8x128xf32> -> vector<8x128xf32>
    %261 = arith.addf %259, %260 : vector<8x128xf32>
    %262 = vector.extract_strided_slice %261 {offsets = [0, 0], sizes = [8, 96], strides = [1, 1]} : vector<8x128xf32> to vector<8x96xf32>
    %263 = arith.negf %262 : vector<8x96xf32>
    %264 = math.exp %263 : vector<8x96xf32>
    %cst_78 = arith.constant 1.000000e+00 : f32
    %265 = vector.broadcast %cst_78 : f32 to vector<8x96xf32>
    %266 = arith.addf %265, %264 : vector<8x96xf32>
    %267 = arith.divf %265, %266 : vector<8x96xf32>
    %268 = vector.extract_strided_slice %261 {offsets = [0, 96], sizes = [8, 32], strides = [1, 1]} : vector<8x128xf32> to vector<8x32xf32>
    %269 = math.tanh %268 : vector<8x32xf32>
    %270 = vector.extract_strided_slice %267 {offsets = [0, 0], sizes = [8, 32], strides = [1, 1]} : vector<8x96xf32> to vector<8x32xf32>
    %271 = vector.extract_strided_slice %267 {offsets = [0, 32], sizes = [8, 32], strides = [1, 1]} : vector<8x96xf32> to vector<8x32xf32>
    %272 = vector.extract_strided_slice %267 {offsets = [0, 64], sizes = [8, 32], strides = [1, 1]} : vector<8x96xf32> to vector<8x32xf32>
    %273 = arith.mulf %271, %253 : vector<8x32xf32>
    %274 = arith.mulf %270, %269 : vector<8x32xf32>
    %275 = arith.addf %273, %274 : vector<8x32xf32>
    %276 = math.tanh %275 : vector<8x32xf32>
    %277 = arith.mulf %272, %276 : vector<8x32xf32>
    %c3_i32_79 = arith.constant 3 : i32
    %c8_i32_80 = arith.constant 8 : i32
    %278 = arith.muli %c3_i32_79, %c8_i32_80 : i32
    %279 = tpu.assume_multiple %278, 8 : i32
    %280 = arith.index_cast %279 : i32 to index
    %c0_81 = arith.constant 0 : index
    %281 = vector.load %arg11[%280, %c0_81] : memref<64x128xf32, #tpu.memory_space<vmem>>, vector<8x128xf32>
    %cst_82 = arith.constant dense<0.000000e+00> : vector<8x128xf32>
    %282 = tpu.matmul %277, %203, %cst_82 {dimension_numbers = #tpu.dot_dimension_numbers<[1], [0], [0], [1], [0, 0, 1, 1], [], []>} : vector<8x32xf32>, vector<32x128xf32>, vector<8x128xf32> -> vector<8x128xf32>
    %283 = arith.addf %281, %282 : vector<8x128xf32>
    %284 = vector.extract_strided_slice %283 {offsets = [0, 0], sizes = [8, 96], strides = [1, 1]} : vector<8x128xf32> to vector<8x96xf32>
    %285 = arith.negf %284 : vector<8x96xf32>
    %286 = math.exp %285 : vector<8x96xf32>
    %cst_83 = arith.constant 1.000000e+00 : f32
    %287 = vector.broadcast %cst_83 : f32 to vector<8x96xf32>
    %288 = arith.addf %287, %286 : vector<8x96xf32>
    %289 = arith.divf %287, %288 : vector<8x96xf32>
    %290 = vector.extract_strided_slice %283 {offsets = [0, 96], sizes = [8, 32], strides = [1, 1]} : vector<8x128xf32> to vector<8x32xf32>
    %291 = math.tanh %290 : vector<8x32xf32>
    %292 = vector.extract_strided_slice %289 {offsets = [0, 0], sizes = [8, 32], strides = [1, 1]} : vector<8x96xf32> to vector<8x32xf32>
    %293 = vector.extract_strided_slice %289 {offsets = [0, 32], sizes = [8, 32], strides = [1, 1]} : vector<8x96xf32> to vector<8x32xf32>
    %294 = vector.extract_strided_slice %289 {offsets = [0, 64], sizes = [8, 32], strides = [1, 1]} : vector<8x96xf32> to vector<8x32xf32>
    %295 = arith.mulf %293, %275 : vector<8x32xf32>
    %296 = arith.mulf %292, %291 : vector<8x32xf32>
    %297 = arith.addf %295, %296 : vector<8x32xf32>
    %298 = math.tanh %297 : vector<8x32xf32>
    %299 = arith.mulf %294, %298 : vector<8x32xf32>
    %c4_i32_84 = arith.constant 4 : i32
    %c8_i32_85 = arith.constant 8 : i32
    %300 = arith.muli %c4_i32_84, %c8_i32_85 : i32
    %301 = tpu.assume_multiple %300, 8 : i32
    %302 = arith.index_cast %301 : i32 to index
    %c0_86 = arith.constant 0 : index
    %303 = vector.load %arg11[%302, %c0_86] : memref<64x128xf32, #tpu.memory_space<vmem>>, vector<8x128xf32>
    %cst_87 = arith.constant dense<0.000000e+00> : vector<8x128xf32>
    %304 = tpu.matmul %299, %203, %cst_87 {dimension_numbers = #tpu.dot_dimension_numbers<[1], [0], [0], [1], [0, 0, 1, 1], [], []>} : vector<8x32xf32>, vector<32x128xf32>, vector<8x128xf32> -> vector<8x128xf32>
    %305 = arith.addf %303, %304 : vector<8x128xf32>
    %306 = vector.extract_strided_slice %305 {offsets = [0, 0], sizes = [8, 96], strides = [1, 1]} : vector<8x128xf32> to vector<8x96xf32>
    %307 = arith.negf %306 : vector<8x96xf32>
    %308 = math.exp %307 : vector<8x96xf32>
    %cst_88 = arith.constant 1.000000e+00 : f32
    %309 = vector.broadcast %cst_88 : f32 to vector<8x96xf32>
    %310 = arith.addf %309, %308 : vector<8x96xf32>
    %311 = arith.divf %309, %310 : vector<8x96xf32>
    %312 = vector.extract_strided_slice %305 {offsets = [0, 96], sizes = [8, 32], strides = [1, 1]} : vector<8x128xf32> to vector<8x32xf32>
    %313 = math.tanh %312 : vector<8x32xf32>
    %314 = vector.extract_strided_slice %311 {offsets = [0, 0], sizes = [8, 32], strides = [1, 1]} : vector<8x96xf32> to vector<8x32xf32>
    %315 = vector.extract_strided_slice %311 {offsets = [0, 32], sizes = [8, 32], strides = [1, 1]} : vector<8x96xf32> to vector<8x32xf32>
    %316 = vector.extract_strided_slice %311 {offsets = [0, 64], sizes = [8, 32], strides = [1, 1]} : vector<8x96xf32> to vector<8x32xf32>
    %317 = arith.mulf %315, %297 : vector<8x32xf32>
    %318 = arith.mulf %314, %313 : vector<8x32xf32>
    %319 = arith.addf %317, %318 : vector<8x32xf32>
    %320 = math.tanh %319 : vector<8x32xf32>
    %321 = arith.mulf %316, %320 : vector<8x32xf32>
    %c5_i32_89 = arith.constant 5 : i32
    %c8_i32_90 = arith.constant 8 : i32
    %322 = arith.muli %c5_i32_89, %c8_i32_90 : i32
    %323 = tpu.assume_multiple %322, 8 : i32
    %324 = arith.index_cast %323 : i32 to index
    %c0_91 = arith.constant 0 : index
    %325 = vector.load %arg11[%324, %c0_91] : memref<64x128xf32, #tpu.memory_space<vmem>>, vector<8x128xf32>
    %cst_92 = arith.constant dense<0.000000e+00> : vector<8x128xf32>
    %326 = tpu.matmul %321, %203, %cst_92 {dimension_numbers = #tpu.dot_dimension_numbers<[1], [0], [0], [1], [0, 0, 1, 1], [], []>} : vector<8x32xf32>, vector<32x128xf32>, vector<8x128xf32> -> vector<8x128xf32>
    %327 = arith.addf %325, %326 : vector<8x128xf32>
    %328 = vector.extract_strided_slice %327 {offsets = [0, 0], sizes = [8, 96], strides = [1, 1]} : vector<8x128xf32> to vector<8x96xf32>
    %329 = arith.negf %328 : vector<8x96xf32>
    %330 = math.exp %329 : vector<8x96xf32>
    %cst_93 = arith.constant 1.000000e+00 : f32
    %331 = vector.broadcast %cst_93 : f32 to vector<8x96xf32>
    %332 = arith.addf %331, %330 : vector<8x96xf32>
    %333 = arith.divf %331, %332 : vector<8x96xf32>
    %334 = vector.extract_strided_slice %327 {offsets = [0, 96], sizes = [8, 32], strides = [1, 1]} : vector<8x128xf32> to vector<8x32xf32>
    %335 = math.tanh %334 : vector<8x32xf32>
    %336 = vector.extract_strided_slice %333 {offsets = [0, 0], sizes = [8, 32], strides = [1, 1]} : vector<8x96xf32> to vector<8x32xf32>
    %337 = vector.extract_strided_slice %333 {offsets = [0, 32], sizes = [8, 32], strides = [1, 1]} : vector<8x96xf32> to vector<8x32xf32>
    %338 = vector.extract_strided_slice %333 {offsets = [0, 64], sizes = [8, 32], strides = [1, 1]} : vector<8x96xf32> to vector<8x32xf32>
    %339 = arith.mulf %337, %319 : vector<8x32xf32>
    %340 = arith.mulf %336, %335 : vector<8x32xf32>
    %341 = arith.addf %339, %340 : vector<8x32xf32>
    %342 = math.tanh %341 : vector<8x32xf32>
    %343 = arith.mulf %338, %342 : vector<8x32xf32>
    %c6_i32_94 = arith.constant 6 : i32
    %c8_i32_95 = arith.constant 8 : i32
    %344 = arith.muli %c6_i32_94, %c8_i32_95 : i32
    %345 = tpu.assume_multiple %344, 8 : i32
    %346 = arith.index_cast %345 : i32 to index
    %c0_96 = arith.constant 0 : index
    %347 = vector.load %arg11[%346, %c0_96] : memref<64x128xf32, #tpu.memory_space<vmem>>, vector<8x128xf32>
    %cst_97 = arith.constant dense<0.000000e+00> : vector<8x128xf32>
    %348 = tpu.matmul %343, %203, %cst_97 {dimension_numbers = #tpu.dot_dimension_numbers<[1], [0], [0], [1], [0, 0, 1, 1], [], []>} : vector<8x32xf32>, vector<32x128xf32>, vector<8x128xf32> -> vector<8x128xf32>
    %349 = arith.addf %347, %348 : vector<8x128xf32>
    %350 = vector.extract_strided_slice %349 {offsets = [0, 0], sizes = [8, 96], strides = [1, 1]} : vector<8x128xf32> to vector<8x96xf32>
    %351 = arith.negf %350 : vector<8x96xf32>
    %352 = math.exp %351 : vector<8x96xf32>
    %cst_98 = arith.constant 1.000000e+00 : f32
    %353 = vector.broadcast %cst_98 : f32 to vector<8x96xf32>
    %354 = arith.addf %353, %352 : vector<8x96xf32>
    %355 = arith.divf %353, %354 : vector<8x96xf32>
    %356 = vector.extract_strided_slice %349 {offsets = [0, 96], sizes = [8, 32], strides = [1, 1]} : vector<8x128xf32> to vector<8x32xf32>
    %357 = math.tanh %356 : vector<8x32xf32>
    %358 = vector.extract_strided_slice %355 {offsets = [0, 0], sizes = [8, 32], strides = [1, 1]} : vector<8x96xf32> to vector<8x32xf32>
    %359 = vector.extract_strided_slice %355 {offsets = [0, 32], sizes = [8, 32], strides = [1, 1]} : vector<8x96xf32> to vector<8x32xf32>
    %360 = vector.extract_strided_slice %355 {offsets = [0, 64], sizes = [8, 32], strides = [1, 1]} : vector<8x96xf32> to vector<8x32xf32>
    %361 = arith.mulf %359, %341 : vector<8x32xf32>
    %362 = arith.mulf %358, %357 : vector<8x32xf32>
    %363 = arith.addf %361, %362 : vector<8x32xf32>
    %364 = math.tanh %363 : vector<8x32xf32>
    %365 = arith.mulf %360, %364 : vector<8x32xf32>
    %c7_i32_99 = arith.constant 7 : i32
    %c8_i32_100 = arith.constant 8 : i32
    %366 = arith.muli %c7_i32_99, %c8_i32_100 : i32
    %367 = tpu.assume_multiple %366, 8 : i32
    %368 = arith.index_cast %367 : i32 to index
    %c0_101 = arith.constant 0 : index
    %369 = vector.load %arg11[%368, %c0_101] : memref<64x128xf32, #tpu.memory_space<vmem>>, vector<8x128xf32>
    %cst_102 = arith.constant dense<0.000000e+00> : vector<8x128xf32>
    %370 = tpu.matmul %365, %203, %cst_102 {dimension_numbers = #tpu.dot_dimension_numbers<[1], [0], [0], [1], [0, 0, 1, 1], [], []>} : vector<8x32xf32>, vector<32x128xf32>, vector<8x128xf32> -> vector<8x128xf32>
    %371 = arith.addf %369, %370 : vector<8x128xf32>
    %372 = vector.extract_strided_slice %371 {offsets = [0, 0], sizes = [8, 96], strides = [1, 1]} : vector<8x128xf32> to vector<8x96xf32>
    %373 = arith.negf %372 : vector<8x96xf32>
    %374 = math.exp %373 : vector<8x96xf32>
    %cst_103 = arith.constant 1.000000e+00 : f32
    %375 = vector.broadcast %cst_103 : f32 to vector<8x96xf32>
    %376 = arith.addf %375, %374 : vector<8x96xf32>
    %377 = arith.divf %375, %376 : vector<8x96xf32>
    %378 = vector.extract_strided_slice %371 {offsets = [0, 96], sizes = [8, 32], strides = [1, 1]} : vector<8x128xf32> to vector<8x32xf32>
    %379 = math.tanh %378 : vector<8x32xf32>
    %380 = vector.extract_strided_slice %377 {offsets = [0, 0], sizes = [8, 32], strides = [1, 1]} : vector<8x96xf32> to vector<8x32xf32>
    %381 = vector.extract_strided_slice %377 {offsets = [0, 32], sizes = [8, 32], strides = [1, 1]} : vector<8x96xf32> to vector<8x32xf32>
    %382 = vector.extract_strided_slice %377 {offsets = [0, 64], sizes = [8, 32], strides = [1, 1]} : vector<8x96xf32> to vector<8x32xf32>
    %383 = arith.mulf %381, %363 : vector<8x32xf32>
    %384 = arith.mulf %380, %379 : vector<8x32xf32>
    %385 = arith.addf %383, %384 : vector<8x32xf32>
    %386 = math.tanh %385 : vector<8x32xf32>
    %387 = arith.mulf %382, %386 : vector<8x32xf32>
    %c8_i32_104 = arith.constant 8 : i32
    %c0_105 = arith.constant 0 : index
    %c0_106 = arith.constant 0 : index
    %388 = vector.load %arg7[%c0_105, %c0_106] : memref<1x32xf32, #tpu.memory_space<vmem>>, vector<1x32xf32>
    %389 = vector.broadcast %388 : vector<1x32xf32> to vector<8x32xf32>
    %390 = arith.mulf %387, %389 : vector<8x32xf32>
    %cst_107 = arith.constant dense<0.000000e+00> : vector<8xf32>
    %391 = vector.multi_reduction <add>, %390, %cst_107 [1] : vector<8x32xf32> to vector<8xf32>
    %392 = vector.shape_cast %391 : vector<8xf32> to vector<8x1xf32>
    %c0_108 = arith.constant 0 : index
    %c0_109 = arith.constant 0 : index
    %393 = vector.load %arg8[%c0_108, %c0_109] : memref<1x1xf32, #tpu.memory_space<vmem>>, vector<1x1xf32>
    %394 = vector.broadcast %393 : vector<1x1xf32> to vector<8x1xf32>
    %395 = arith.addf %392, %394 : vector<8x1xf32>
    %396 = arith.negf %395 : vector<8x1xf32>
    %397 = math.exp %396 : vector<8x1xf32>
    %cst_110 = arith.constant 1.000000e+00 : f32
    %398 = vector.broadcast %cst_110 : f32 to vector<8x1xf32>
    %399 = arith.addf %398, %397 : vector<8x1xf32>
    %400 = arith.divf %398, %399 : vector<8x1xf32>
    %c0_111 = arith.constant 0 : index
    %c0_112 = arith.constant 0 : index
    %401 = vector.load %arg9[%c0_111, %c0_112] : memref<8x1xf32, #tpu.memory_space<vmem>>, vector<8x1xf32>
    tpu.vector_store %arg9[%c0_111, %c0_112], %400 {strides = array<i32>} : memref<8x1xf32, #tpu.memory_space<vmem>>, vector<8x1xf32>,
    return
  }
}

</mosaic_0001>

<bundles_post_ra>
// kernel: tpu_custom_call.1
= control target key start
LH: loop header
LB: loop body
LE: loop exit
PB: predicated region body
PF: predicated region fallthrough
CT: control target
= control target key end

     0   :  { %s3080_s0 = inlined_call_operand.vmem [shape: f32[64,8], index: 0, kind: input, shape index: {}]   ;;  %s3081_s1 = inlined_call_operand.vmem [shape: f32[8,128], index: 1, kind: input, shape index: {}]   ;;  %s3082_s2 = inlined_call_operand.vmem [shape: f32[32,128], index: 2, kind: input, shape index: {}]   ;;  %s3083_s3 = inlined_call_operand.vmem [shape: f32[1,128], index: 3, kind: input, shape index: {}]   ;;  %s3084_s4 = inlined_call_operand.vmem [shape: f32[32,128], index: 4, kind: input, shape index: {}]   ;;  %s3085_s5 = inlined_call_operand.hbm [shape: f32[32,128], index: 5, kind: input, shape index: {}]   ;;  %s3086_s6 = inlined_call_operand.vmem [shape: f32[1,128], index: 6, kind: input, shape index: {}]   ;;  %s3087_s7 = inlined_call_operand.vmem [shape: f32[1,32], index: 7, kind: input, shape index: {}]   ;;  %s3088_s8 = inlined_call_operand.<no memory space> [shape: f32[1,1], index: 8, kind: input, shape index: {}]   ;;  %s3089_s9 = inlined_call_operand.vmem [shape: f32[8,1], index: 9, kind: output, shape index: {}]  }
   0x1   :  { %v14_v0 = vstv %s3088_s8 }
   0x2   :  { %15 = vst [vmem:[#allocation4] sm:$0x1] %v14_v0 }
   0x3   :  { %16 = vsyncpa [#allocation6], 0  ;;  %s2677_s11 = smov [#allocation5]   ;;  %s2653_s15 = scalar_lea.hbm %s3085_s5, 512 }
   0x4   :  { %s32_s12 = sshll.u32 %s2677_s11, 4  ;;  %p2654_p0 = scmp.ne.s32.totalorder %s3085_s5, %s2653_s15  ;;  %s33_s12 = int_to_ptr.vmem [resolvable:$true] %s32_s12 }
   0x5   :  { %p2657_p1 = scmp.lt.u32.totalorder %s2653_s15, %s3085_s5 }
   0x7   :  { %p2659_p2 = pnand %p2657_p1, %p2654_p0 }
   0x9   :  { %2662 = shalt.err (!%p2659_p2)
}
   0xa   :  { %s2663_s8 = scalar_lea.vmem %s33_s12, 512  ;;  %p2668_p4 = scmp.lt.s32.totalorder %s33_s12, %s33_s12 }
   0xb   :  { %p2664_p3 = scmp.ne.s32.totalorder %s33_s12, %s2663_s8  ;;  %p2669_p5 = scmp.lt.s32.totalorder %s2663_s8, %s2663_s8 }
   0xd   :  { %p2670_p6 = por %p2669_p5, %p2668_p4 }
   0xf   :  { %p2671_p7 = pnand %p2670_p6, %p2664_p3 }
  0x11   :  { %2674 = shalt.err (!%p2671_p7)
}
  0x12   :  { %s2678_s20 = smov 128   ;;  %s2679_s21 = smov 8  }
  0x13   :  { %38 = dma.hbm_to_vmem [thread:$0]  %s3085_s5, 512, %s33_s12, [#allocation6], %s2678_s20, %s2678_s20, %s2679_s21  }
  0x14   :  { %2675 = dma.done.wait [#allocation6], 512  }
  0x15   :  { %2676 = vsyncadd [#allocation6], 4294966784  ;;  %v2680_v1 = vmov 0.0|0.0   ;;  %vm2681_vm0 = vmmov 0   ;;  %v2682_v2 = vmov 0.0   ;;  %vm68_vm1 = vcmask 64512  }
  0x16   :  { %2409 = vmatprep.subr.bf16.mxu1 %v2680_v1  ;;  %2221 = vmatprep.mubr.msk.f32.mxu1 %vm2681_vm0, %v2682_v2  ;;  %v49_v3 = vld [vmem:[%s3082_s2] sm:$0xff]  ;;  %v50_v4 = vld [vmem:[%s3082_s2 + $0x8] sm:$0xff]  ;;  %v51_v9 = vld [vmem:[%s3082_s2 + $0x10] sm:$0xff]  ;;  %s2683_s16 = smov 32   ;;  %vm207_vm2 = vcmask 261120   ;;  %vm2040_vm3 = vcmask 7168  }
  0x17   :  { %v48_v5 = vld [vmem:[%s3081_s1] sm:$0xff]  ;;  %v2762_v6 = vpack.c.bf16 %v50_v4, %v49_v3  ;;  %v55_v8 = vld [vmem:[%s3080_s0 + $0x8] sm:$0xff]  ;;  %v52_v10 = vld [vmem:[%s3082_s2 + $0x18] sm:$0xff] }
  0x18   :  { %2199 = vmatprep.subr.mxu0 %v48_v5  ;;  %v54_v7 = vld [vmem:[%s3080_s0] sm:$0xff]  ;;  %v2779_v11 = vpack.c.bf16 %v52_v10, %v51_v9  ;;  %v56_v47 = vld [vmem:[%s3080_s0 + $0x10] sm:$0xff]  ;;  %v57_v48 = vld [vmem:[%s3080_s0 + $0x18] sm:$0xff] }
  0x19   :  { %2200 = vmatpush3.msra.mxu0 %v48_v5  ;;  %2201 = vmatprep.mubr.msk.f32.mxu0 %vm68_vm1, %v54_v7  ;;  %v2799_v13 = vld [vmem:[%s3083_s3] ss:$0 sm:$0xff]  ;;  %s2684_s3 = smov 64   ;;  %v59_v50 = vld [vmem:[%s3080_s0 + $0x28] sm:$0xff]  ;;  %v60_v51 = vld [vmem:[%s3080_s0 + $0x30] sm:$0xff] }
  0x1a   :  { %2411 = vmatpush3.bf16.msra.mxu1 %v2762_v6  ;;  %2202 = vmatmul.mubr.msk.f32.vlgmr.msra.gmra.mrb[0].mxu0 %vm68_vm1, %v55_v8  ;;  %v58_v49 = vld [vmem:[%s3080_s0 + $0x20] sm:$0xff]  ;;  %v61_v52 = vld [vmem:[%s3080_s0 + $0x38] sm:$0xff] }
  0x1b   :  { %2412 = vmatprep.subr.bf16.mxu1 %v2680_v1  ;;  %2421 = vmatprep.subr.bf16.mxu0 %v2680_v1 }
  0x1c   :  { %2423 = vmatpush3.bf16.msra.mxu0 %v2762_v6  ;;  %2204 = vmatprep.mubr.msk.f32.mxu0 %vm68_vm1, %v56_v47 }
  0x1d   :  { %2424 = vmatprep.subr.bf16.mxu0 %v2680_v1 }
  0x1e   :  { %2414 = vmatpush3.bf16.msra.mxu1 %v2779_v11  ;;  %2205 = vmatmul.mubr.msk.f32.gmra.mrb[2].mxu0 %vm68_vm1, %v57_v48 }
  0x1f   :  { %2415 = vmatprep.subr.bf16.mxu1 %v2680_v1  ;;  %2207 = vmatprep.mubr.msk.f32.mxu0 %vm68_vm1, %v58_v49 }
  0x20   :  { %2426 = vmatpush3.bf16.msra.mxu0 %v2779_v11 }
  0x21   :  { %2222 = vmatmul.mubr.f32.vlgmr.msra.gmra.mrb[0].mxu1 %v2682_v2  ;;  %2433 = vmatprep.subr.bf16.mxu0 %v2680_v1 }
  0x22   :  { %2417 = vmatpush3.bf16.msra.mxu1 %v2762_v6  ;;  %2232 = vmatprep.mubr.msk.f32.mxu1 %vm2681_vm0, %v2682_v2 }
  0x23   :  { %2418 = vmatprep.subr.bf16.mxu1 %v2680_v1  ;;  %2208 = vmatmul.mubr.msk.f32.gmra.mrb[4].mxu0 %vm68_vm1, %v59_v50 }
  0x24   :  { %2210 = vmatprep.mubr.msk.f32.mxu0 %vm68_vm1, %v60_v51 }
  0x26   :  { %2420 = vmatpush3.bf16.msra.mxu1 %v2779_v11 }
  0x27   :  { %2427 = vmatprep.subr.bf16.mxu1 %v2680_v1  ;;  %2211 = vmatmul.mubr.msk.f32.gmra.mrb[6].mxu0 %vm68_vm1, %v61_v52 }
  0x28   :  { %2243 = vmatprep.mubr.msk.f32.mxu0 %vm2681_vm0, %v2682_v2 }
  0xed   :  { %v2203_v12 = vpop.f32.mrb[0].mxu0 }
  0xee   :  { %v159_v14 = vpop.f32.mrb[1].mxu0  ;;  %v165_v33 = vadd.f32 %v2203_v12, %v2799_v13 }
  0xef   :  { %v160_v15 = vadd.f32 %v2799_v13, %v159_v14 }
  0xf1   :  { %v2206_v56 = vpop.f32.mrb[2].mxu0 }
  0xf2   :  { %v169_v57 = vpop.f32.mrb[3].mxu0 }
  0xf3   :  { %v170_v63 = vadd.f32 %v2799_v13, %v169_v57 }
  0xf4   :  { %v277_v16 = vpop.f32.mrb[0].mxu1 }
  0xf5   :  { %v281_v17 = vadd.f32 %v277_v16, %v160_v15  ;;  %v2223_v18 = vpop.f32.mrb[1].mxu1 }
  0xf6   :  { %v2845_v58 = vpop.f32.mrb[4].mxu0 }
  0xf7   :  { %2521 = vtanh.f32 %v281_v17  ;;  %v2056_v20 = vmul.f32 -1.442695, %v281_v17  ;;  %v2847_v59 = vpop.f32.mrb[5].mxu0 }
  0xf9   :  { %2523 = vpow2.f32 %v2056_v20 }
  0xfa   :  { %v2849_v60 = vpop.f32.mrb[6].mxu0 }
  0xfb   :  { %v2851_v61 = vpop.f32.mrb[7].mxu0 }
 0x101   :  { %v2522_v19 = vpop.eup %2521 }
 0x102   :  { %291 = vrot.lane.b32.xlu0 %v2522_v19, %s2683_s16 }
 0x103   :  { %v2524_v21 = vpop.eup %2523 }
 0x104   :  { %v285_v22 = vadd.f32 1.0, %v2524_v21 }
 0x106   :  { %2525 = vrcp.f32 %v285_v22  ;;  %v175_v22 = vadd.f32 %v2206_v56, %v2799_v13 }
 0x110   :  { %v2526_v23 = vpop.eup %2525 }
 0x111   :  { %v289_v26 = vmul.f32 0.0, %v2526_v23 }
 0x174   :  { %v292_v24 = vpop.permute.xlu0 %291 }
 0x175   :  { %v294_v25 = vmul.f32 %v2526_v23, %v292_v24 }
 0x177   :  { %296 = vrot.lane.b32.xlu0 %v294_v25, %s2683_s16 }
 0x1e9   :  { %v297_v27 = vpop.permute.xlu0 %296 }
 0x1ea   :  { %v299_v28 = vadd.f32 %v297_v27, %v289_v26 }
 0x1ec   :  { %2527 = vtanh.f32 %v299_v28 }
 0x1f6   :  { %v2528_v29 = vpop.eup %2527 }
 0x1f7   :  { %302 = vrot.lane.b32.xlu1 %v2528_v29, %s2683_s16 }
 0x269   :  { %v303_v30 = vpop.permute.xlu1 %302 }
 0x26a   :  { %v305_v31 = vmul.f32 %v2526_v23, %v303_v30 }
 0x26c   :  { %307 = vrot.lane.b32.xlu1 %v305_v31, %s2684_s3 }
 0x2de   :  { %v308_v32 = vpop.permute.xlu1 %307 }
 0x2df   :  { %310 = vst.msk [vmem:[#allocation2] sm:$0xff] %vm207_vm2, %v308_v32  ;;  %2233 = vmatmul.mubr.msk.f32.vlgmr.msra.gmra.mrb[2].mxu1 %vm207_vm2, %v308_v32 }
 0x2e0   :  { %2429 = vmatpush3.bf16.msra.mxu1 %v2762_v6  ;;  %2254 = vmatprep.mubr.msk.f32.mxu1 %vm2681_vm0, %v2682_v2 }
 0x2e1   :  { %2430 = vmatprep.subr.bf16.mxu1 %v2680_v1 }
 0x2e4   :  { %2432 = vmatpush3.bf16.msra.mxu1 %v2779_v11 }
 0x2e5   :  { %2439 = vmatprep.subr.bf16.mxu1 %v2680_v1 }
 0x3b2   :  { %v381_v34 = vpop.f32.mrb[2].mxu1 }
 0x3b3   :  { %v385_v35 = vadd.f32 %v381_v34, %v165_v33  ;;  %v2234_v36 = vpop.f32.mrb[3].mxu1 }
 0x3b5   :  { %2529 = vtanh.f32 %v385_v35  ;;  %v2058_v38 = vmul.f32 -1.442695, %v385_v35 }
 0x3b7   :  { %2531 = vpow2.f32 %v2058_v38 }
 0x3bf   :  { %v2530_v37 = vpop.eup %2529 }
 0x3c0   :  { %395 = vrot.lane.b32.xlu0 %v2530_v37, %s2683_s16 }
 0x3c1   :  { %v2532_v39 = vpop.eup %2531 }
 0x3c2   :  { %v389_v40 = vadd.f32 1.0, %v2532_v39 }
 0x3c4   :  { %2533 = vrcp.f32 %v389_v40  ;;  %v180_v40 = vadd.f32 %v2799_v13, %v2847_v59  ;;  %v185_v59 = vadd.f32 %v2845_v58, %v2799_v13 }
 0x3ce   :  { %v2534_v41 = vpop.eup %2533 }
 0x3cf   :  { %v393_v44 = vmul.f32 %v2534_v41, %v299_v28 }
 0x432   :  { %v396_v42 = vpop.permute.xlu0 %395 }
 0x433   :  { %v398_v43 = vmul.f32 %v2534_v41, %v396_v42 }
 0x435   :  { %400 = vrot.lane.b32.xlu1 %v398_v43, %s2683_s16 }
 0x4a7   :  { %v401_v45 = vpop.permute.xlu1 %400 }
 0x4a8   :  { %v403_v46 = vadd.f32 %v401_v45, %v393_v44 }
 0x4aa   :  { %2535 = vtanh.f32 %v403_v46 }
 0x4b4   :  { %v2536_v53 = vpop.eup %2535 }
 0x4b5   :  { %406 = vrot.lane.b32.xlu0 %v2536_v53, %s2683_s16 }
 0x527   :  { %v407_v54 = vpop.permute.xlu0 %406 }
 0x528   :  { %v409_v55 = vmul.f32 %v2534_v41, %v407_v54 }
 0x52a   :  { %411 = vrot.lane.b32.xlu1 %v409_v55, %s2684_s3 }
 0x59c   :  { %v412_v62 = vpop.permute.xlu1 %411 }
 0x59d   :  { %415 = vst.msk [vmem:[#allocation2 + $0x8] sm:$0xff] %vm207_vm2, %v412_v62  ;;  %2244 = vmatmul.mubr.msk.f32.vlgmr.msra.gmra.mrb[8].mxu0 %vm207_vm2, %v412_v62 }
 0x59e   :  { %2435 = vmatpush3.bf16.msra.mxu0 %v2762_v6  ;;  %2265 = vmatprep.mubr.msk.f32.mxu0 %vm2681_vm0, %v2682_v2 }
 0x59f   :  { %2436 = vmatprep.subr.bf16.mxu0 %v2680_v1 }
 0x5a2   :  { %2438 = vmatpush3.bf16.msra.mxu0 %v2779_v11 }
 0x5a3   :  { %2445 = vmatprep.subr.bf16.mxu0 %v2680_v1 }
 0x670   :  { %v486_v0 = vpop.f32.mrb[8].mxu0 }
 0x671   :  { %v490_v3 = vadd.f32 %v486_v0, %v170_v63  ;;  %v2245_v4 = vpop.f32.mrb[9].mxu0 }
 0x673   :  { %2537 = vtanh.f32 %v490_v3  ;;  %v2060_v7 = vmul.f32 -1.442695, %v490_v3 }
 0x675   :  { %2539 = vpow2.f32 %v2060_v7 }
 0x67d   :  { %v2538_v5 = vpop.eup %2537 }
 0x67e   :  { %500 = vrot.lane.b32.xlu0 %v2538_v5, %s2683_s16 }
 0x67f   :  { %v2540_v8 = vpop.eup %2539 }
 0x680   :  { %v494_v9 = vadd.f32 1.0, %v2540_v8 }
 0x682   :  { %2541 = vrcp.f32 %v494_v9 }
 0x68c   :  { %v2542_v10 = vpop.eup %2541 }
 0x68d   :  { %v498_v15 = vmul.f32 %v2542_v10, %v403_v46 }
 0x6f0   :  { %v501_v12 = vpop.permute.xlu0 %500 }
 0x6f1   :  { %v503_v14 = vmul.f32 %v2542_v10, %v501_v12  ;;  %v1046_v12 = vld [vmem:[%s3084_s4] sm:$0xff] }
 0x6f3   :  { %505 = vrot.lane.b32.xlu1 %v503_v14, %s2683_s16  ;;  %v1047_v14 = vld [vmem:[%s3084_s4 + $0x8] sm:$0xff] }
 0x765   :  { %v506_v16 = vpop.permute.xlu1 %505 }
 0x766   :  { %v508_v17 = vadd.f32 %v506_v16, %v498_v15  ;;  %v2457_v15 = vpack.c.bf16 %v1047_v14, %v1046_v12 }
 0x768   :  { %2543 = vtanh.f32 %v508_v17 }
 0x772   :  { %v2544_v18 = vpop.eup %2543 }
 0x773   :  { %511 = vrot.lane.b32.xlu0 %v2544_v18, %s2683_s16 }
 0x7e5   :  { %v512_v19 = vpop.permute.xlu0 %511 }
 0x7e6   :  { %v514_v20 = vmul.f32 %v2542_v10, %v512_v19  ;;  %v1048_v19 = vld [vmem:[%s3084_s4 + $0x10] sm:$0xff] }
 0x7e8   :  { %516 = vrot.lane.b32.xlu1 %v514_v20, %s2684_s3  ;;  %v1049_v20 = vld [vmem:[%s3084_s4 + $0x18] sm:$0xff] }
 0x85a   :  { %v517_v21 = vpop.permute.xlu1 %516 }
 0x85b   :  { %520 = vst.msk [vmem:[#allocation2 + $0x10] sm:$0xff] %vm207_vm2, %v517_v21  ;;  %2255 = vmatmul.mubr.msk.f32.vlgmr.msra.gmra.mrb[4].mxu1 %vm207_vm2, %v517_v21  ;;  %v2461_v21 = vpack.c.bf16 %v1049_v20, %v1048_v19 }
 0x85c   :  { %2441 = vmatpush3.bf16.msra.mxu1 %v2762_v6  ;;  %2276 = vmatprep.mubr.msk.f32.mxu1 %vm2681_vm0, %v2682_v2 }
 0x85d   :  { %2442 = vmatprep.subr.bf16.mxu1 %v2680_v1 }
 0x860   :  { %2444 = vmatpush3.bf16.msra.mxu1 %v2779_v11 }
 0x861   :  { %2451 = vmatprep.subr.bf16.mxu1 %v2680_v1 }
 0x92e   :  { %v591_v23 = vpop.f32.mrb[4].mxu1 }
 0x92f   :  { %v595_v24 = vadd.f32 %v591_v23, %v175_v22  ;;  %v2256_v25 = vpop.f32.mrb[5].mxu1  ;;  %v1055_v23 = vld [vmem:[#allocation2] sm:$0xff] }
 0x930   :  { %v1057_v25 = vld [vmem:[#allocation2 + $0x10] sm:$0xff] }
 0x931   :  { %2545 = vtanh.f32 %v595_v24  ;;  %v2062_v27 = vmul.f32 -1.442695, %v595_v24  ;;  %v1056_v24 = vld [vmem:[#allocation2 + $0x8] sm:$0xff] }
 0x933   :  { %2547 = vpow2.f32 %v2062_v27 }
 0x93b   :  { %v2546_v26 = vpop.eup %2545 }
 0x93c   :  { %605 = vrot.lane.b32.xlu0 %v2546_v26, %s2683_s16 }
 0x93d   :  { %v2548_v28 = vpop.eup %2547 }
 0x93e   :  { %v599_v29 = vadd.f32 1.0, %v2548_v28 }
 0x940   :  { %2549 = vrcp.f32 %v599_v29  ;;  %v190_v29 = vadd.f32 %v2799_v13, %v2851_v61 }
 0x94a   :  { %v2550_v30 = vpop.eup %2549 }
 0x94b   :  { %v603_v33 = vmul.f32 %v2550_v30, %v508_v17 }
 0x9ae   :  { %v606_v31 = vpop.permute.xlu0 %605 }
 0x9af   :  { %v608_v32 = vmul.f32 %v2550_v30, %v606_v31 }
 0x9b1   :  { %610 = vrot.lane.b32.xlu1 %v608_v32, %s2683_s16 }
 0xa23   :  { %v611_v34 = vpop.permute.xlu1 %610 }
 0xa24   :  { %v613_v35 = vadd.f32 %v611_v34, %v603_v33 }
 0xa26   :  { %2551 = vtanh.f32 %v613_v35 }
 0xa30   :  { %v2552_v36 = vpop.eup %2551 }
 0xa31   :  { %616 = vrot.lane.b32.xlu0 %v2552_v36, %s2683_s16 }
 0xaa3   :  { %v617_v37 = vpop.permute.xlu0 %616 }
 0xaa4   :  { %v619_v38 = vmul.f32 %v2550_v30, %v617_v37 }
 0xaa6   :  { %621 = vrot.lane.b32.xlu1 %v619_v38, %s2684_s3 }
 0xb18   :  { %v622_v39 = vpop.permute.xlu1 %621 }
 0xb19   :  { %625 = vst.msk [vmem:[#allocation2 + $0x18] sm:$0xff] %vm207_vm2, %v622_v39  ;;  %2266 = vmatmul.mubr.msk.f32.vlgmr.msra.gmra.mrb[10].mxu0 %vm207_vm2, %v622_v39 }
 0xb1a   :  { %2447 = vmatpush3.bf16.msra.mxu0 %v2762_v6  ;;  %2287 = vmatprep.mubr.msk.f32.mxu0 %vm2681_vm0, %v2682_v2 }
 0xb1b   :  { %2448 = vmatprep.subr.bf16.mxu0 %v2680_v1 }
 0xb1e   :  { %2450 = vmatpush3.bf16.msra.mxu0 %v2779_v11 }
 0xb1f   :  { %2458 = vmatprep.subr.bf16.mxu0 %v2457_v15 }
 0xb20   :  { %v1058_v26 = vld [vmem:[#allocation2 + $0x18] sm:$0xff] }
 0xbec   :  { %v696_v41 = vpop.f32.mrb[10].mxu0 }
 0xbed   :  { %v700_v42 = vadd.f32 %v696_v41, %v180_v40  ;;  %v2267_v43 = vpop.f32.mrb[11].mxu0 }
 0xbef   :  { %2553 = vtanh.f32 %v700_v42  ;;  %v2064_v45 = vmul.f32 -1.442695, %v700_v42 }
 0xbf1   :  { %2555 = vpow2.f32 %v2064_v45 }
 0xbf9   :  { %v2554_v44 = vpop.eup %2553 }
 0xbfa   :  { %710 = vrot.lane.b32.xlu0 %v2554_v44, %s2683_s16 }
 0xbfb   :  { %v2556_v46 = vpop.eup %2555 }
 0xbfc   :  { %v704_v47 = vadd.f32 1.0, %v2556_v46 }
 0xbfe   :  { %2557 = vrcp.f32 %v704_v47 }
 0xc08   :  { %v2558_v48 = vpop.eup %2557 }
 0xc09   :  { %v708_v51 = vmul.f32 %v2558_v48, %v613_v35 }
 0xc6c   :  { %v711_v49 = vpop.permute.xlu0 %710 }
 0xc6d   :  { %v713_v50 = vmul.f32 %v2558_v48, %v711_v49  ;;  %v1050_v49 = vld [vmem:[#allocation5] sm:$0xff] }
 0xc6f   :  { %715 = vrot.lane.b32.xlu1 %v713_v50, %s2683_s16  ;;  %v1051_v50 = vld [vmem:[#allocation5 + $0x8] sm:$0xff] }
 0xce1   :  { %v716_v52 = vpop.permute.xlu1 %715 }
 0xce2   :  { %v718_v53 = vadd.f32 %v716_v52, %v708_v51  ;;  %v2945_v51 = vpack.c.bf16 %v1051_v50, %v1050_v49  ;;  %v1052_v52 = vld [vmem:[#allocation5 + $0x10] sm:$0xff] }
 0xce4   :  { %2559 = vtanh.f32 %v718_v53 }
 0xcee   :  { %v2560_v54 = vpop.eup %2559 }
 0xcef   :  { %721 = vrot.lane.b32.xlu0 %v2560_v54, %s2683_s16 }
 0xd61   :  { %v722_v55 = vpop.permute.xlu0 %721 }
 0xd62   :  { %v724_v56 = vmul.f32 %v2558_v48, %v722_v55 }
 0xd64   :  { %726 = vrot.lane.b32.xlu1 %v724_v56, %s2684_s3 }
 0xdd6   :  { %v727_v57 = vpop.permute.xlu1 %726 }
 0xdd7   :  { %730 = vst.msk [vmem:[#allocation2 + $0x20] sm:$0xff] %vm207_vm2, %v727_v57  ;;  %2277 = vmatmul.mubr.msk.f32.vlgmr.msra.gmra.mrb[6].mxu1 %vm207_vm2, %v727_v57 }
 0xdd8   :  { %2453 = vmatpush3.bf16.msra.mxu1 %v2762_v6  ;;  %2298 = vmatprep.mubr.msk.f32.mxu1 %vm2681_vm0, %v2682_v2 }
 0xdd9   :  { %2454 = vmatprep.subr.bf16.mxu1 %v2680_v1 }
 0xddc   :  { %2456 = vmatpush3.bf16.msra.mxu1 %v2779_v11 }
 0xddd   :  { %2465 = vmatprep.subr.bf16.mxu1 %v2680_v1 }
 0xdde   :  { %v1059_v27 = vld [vmem:[#allocation2 + $0x20] sm:$0xff] }
 0xeaa   :  { %v801_v62 = vpop.f32.mrb[6].mxu1 }
 0xeab   :  { %v805_v63 = vadd.f32 %v801_v62, %v185_v59  ;;  %v2278_v0 = vpop.f32.mrb[7].mxu1  ;;  %v195_v62 = vadd.f32 %v2849_v60, %v2799_v13 }
 0xead   :  { %2561 = vtanh.f32 %v805_v63  ;;  %v2066_v6 = vmul.f32 -1.442695, %v805_v63 }
 0xeaf   :  { %2563 = vpow2.f32 %v2066_v6  ;;  %v2975_v6 = vld [vmem:[%s3086_s6] ss:$0 sm:$0xff] }
 0xeb7   :  { %v2562_v3 = vpop.eup %2561 }
 0xeb8   :  { %815 = vrot.lane.b32.xlu0 %v2562_v3, %s2683_s16 }
 0xeb9   :  { %v2564_v4 = vpop.eup %2563 }
 0xeba   :  { %v809_v5 = vadd.f32 1.0, %v2564_v4 }
 0xebc   :  { %2565 = vrcp.f32 %v809_v5 }
 0xec6   :  { %v2566_v7 = vpop.eup %2565 }
 0xec7   :  { %v813_v9 = vmul.f32 %v2566_v7, %v718_v53  ;;  %v1053_v53 = vld [vmem:[#allocation5 + $0x18] sm:$0xff] }
 0xec8   :  { %v2949_v54 = vpack.c.bf16 %v1053_v53, %v1052_v52 }
 0xf2a   :  { %v816_v8 = vpop.permute.xlu0 %815 }
 0xf2b   :  { %v818_v11 = vmul.f32 %v2566_v7, %v816_v8 }
 0xf2d   :  { %820 = vrot.lane.b32.xlu1 %v818_v11, %s2683_s16 }
 0xf9f   :  { %v821_v10 = vpop.permute.xlu1 %820 }
 0xfa0   :  { %v823_v58 = vadd.f32 %v821_v10, %v813_v9 }
 0xfa2   :  { %2567 = vtanh.f32 %v823_v58 }
 0xfac   :  { %v2568_v16 = vpop.eup %2567 }
 0xfad   :  { %826 = vrot.lane.b32.xlu0 %v2568_v16, %s2683_s16 }
0x101f   :  { %v827_v17 = vpop.permute.xlu0 %826 }
0x1020   :  { %v829_v18 = vmul.f32 %v2566_v7, %v827_v17 }
0x1022   :  { %831 = vrot.lane.b32.xlu1 %v829_v18, %s2684_s3 }
0x1094   :  { %v832_v22 = vpop.permute.xlu1 %831 }
0x1095   :  { %835 = vst.msk [vmem:[#allocation2 + $0x28] sm:$0xff] %vm207_vm2, %v832_v22  ;;  %2288 = vmatmul.mubr.msk.f32.vlgmr.msra.gmra.mrb[12].mxu0 %vm207_vm2, %v832_v22 }
0x1096   :  { %2460 = vmatpush3.bf16.msra.mxu0 %v2457_v15  ;;  %2309 = vmatprep.mubr.msk.f32.mxu0 %vm207_vm2, %v1055_v23 }
0x1097   :  { %2462 = vmatprep.subr.bf16.mxu0 %v2461_v21 }
0x109a   :  { %2464 = vmatpush3.bf16.msra.mxu0 %v2461_v21 }
0x109b   :  { %2477 = vmatprep.subr.bf16.mxu0 %v2680_v1 }
0x109c   :  { %v1060_v28 = vld [vmem:[#allocation2 + $0x28] sm:$0xff] }
0x109d   :  { %2310 = vmatmul.mubr.msk.f32.vlgmr.msra.gmra.mrb[14].mxu0 %vm207_vm2, %v1056_v24 }
0x109e   :  { %2312 = vmatprep.mubr.msk.f32.mxu0 %vm207_vm2, %v1057_v25  ;;  %2479 = vmatpush3.bf16.msra.mxu0 %v2945_v51 }
0x109f   :  { %2480 = vmatprep.subr.bf16.mxu0 %v2680_v1 }
0x10a1   :  { %2313 = vmatmul.mubr.msk.f32.gmra.mrb[16].mxu0 %vm207_vm2, %v1058_v26 }
0x10a2   :  { %2315 = vmatprep.mubr.msk.f32.mxu0 %vm207_vm2, %v1059_v27  ;;  %2482 = vmatpush3.bf16.msra.mxu0 %v2949_v54 }
0x10a3   :  { %2489 = vmatprep.subr.bf16.mxu0 %v2680_v1 }
0x10a5   :  { %2316 = vmatmul.mubr.msk.f32.gmra.mrb[18].mxu0 %vm207_vm2, %v1060_v28 }
0x1168   :  { %v906_v30 = vpop.f32.mrb[12].mxu0 }
0x1169   :  { %v910_v31 = vadd.f32 %v906_v30, %v190_v29  ;;  %v2289_v32 = vpop.f32.mrb[13].mxu0 }
0x116b   :  { %2569 = vtanh.f32 %v910_v31  ;;  %v2068_v40 = vmul.f32 -1.442695, %v910_v31 }
0x116d   :  { %2571 = vpow2.f32 %v2068_v40 }
0x1170   :  { %v2929_v33 = vpop.f32.mrb[14].mxu0 }
0x1171   :  { %v1159_v34 = vpop.f32.mrb[15].mxu0 }
0x1172   :  { %v1160_v4 = vadd.f32 %v2975_v6, %v1159_v34 }
0x1174   :  { %v2931_v35 = vpop.f32.mrb[16].mxu0 }
0x1175   :  { %v2570_v36 = vpop.eup %2569  ;;  %v2933_v37 = vpop.f32.mrb[17].mxu0 }
0x1176   :  { %920 = vrot.lane.b32.xlu0 %v2570_v36, %s2683_s16  ;;  %v1165_v36 = vadd.f32 %v2929_v33, %v2975_v6 }
0x1177   :  { %v2572_v61 = vpop.eup %2571 }
0x1178   :  { %v2936_v38 = vpop.f32.mrb[18].mxu0  ;;  %v914_v41 = vadd.f32 1.0, %v2572_v61 }
0x1179   :  { %v2938_v39 = vpop.f32.mrb[19].mxu0 }
0x117a   :  { %2573 = vrcp.f32 %v914_v41 }
0x1184   :  { %v2574_v42 = vpop.eup %2573 }
0x1185   :  { %v918_v45 = vmul.f32 %v2574_v42, %v823_v58 }
0x11e8   :  { %v921_v43 = vpop.permute.xlu0 %920 }
0x11e9   :  { %v923_v44 = vmul.f32 %v2574_v42, %v921_v43 }
0x11eb   :  { %925 = vrot.lane.b32.xlu1 %v923_v44, %s2683_s16 }
0x125d   :  { %v926_v46 = vpop.permute.xlu1 %925 }
0x125e   :  { %v2941_v47 = vadd.f32 %v926_v46, %v918_v45 }
0x1260   :  { %2575 = vtanh.f32 %v2941_v47 }
0x126a   :  { %v2576_v48 = vpop.eup %2575 }
0x126b   :  { %931 = vrot.lane.b32.xlu0 %v2576_v48, %s2683_s16 }
0x12dd   :  { %v932_v55 = vpop.permute.xlu0 %931 }
0x12de   :  { %v934_v56 = vmul.f32 %v2574_v42, %v932_v55 }
0x12e0   :  { %936 = vrot.lane.b32.xlu1 %v934_v56, %s2684_s3 }
0x1352   :  { %v937_v57 = vpop.permute.xlu1 %936 }
0x1353   :  { %940 = vst.msk [vmem:[#allocation2 + $0x30] sm:$0xff] %vm207_vm2, %v937_v57  ;;  %2299 = vmatmul.mubr.msk.f32.vlgmr.msra.gmra.mrb[8].mxu1 %vm207_vm2, %v937_v57 }
0x1354   :  { %2467 = vmatpush3.bf16.msra.mxu1 %v2945_v51  ;;  %2329 = vmatprep.mubr.msk.f32.mxu1 %vm2681_vm0, %v2682_v2 }
0x1355   :  { %2468 = vmatprep.subr.bf16.mxu1 %v2680_v1 }
0x1358   :  { %2470 = vmatpush3.bf16.msra.mxu1 %v2949_v54 }
0x1359   :  { %2471 = vmatprep.subr.bf16.mxu1 %v2680_v1 }
0x135a   :  { %v1061_v59 = vld [vmem:[#allocation2 + $0x30] sm:$0xff] }
0x135b   :  { %2330 = vmatmul.mubr.f32.vlgmr.msra.gmra.mrb[10].mxu1 %v2682_v2  ;;  %2318 = vmatprep.mubr.msk.f32.mxu0 %vm207_vm2, %v1061_v59 }
0x135c   :  { %2473 = vmatpush3.bf16.msra.mxu1 %v2945_v51  ;;  %2340 = vmatprep.mubr.msk.f32.mxu1 %vm2681_vm0, %v2682_v2 }
0x135d   :  { %2474 = vmatprep.subr.bf16.mxu1 %v2680_v1 }
0x1360   :  { %2476 = vmatpush3.bf16.msra.mxu1 %v2949_v54 }
0x1361   :  { %2483 = vmatprep.subr.bf16.mxu1 %v2680_v1 }
0x1426   :  { %v1011_v63 = vpop.f32.mrb[8].mxu1 }
0x1427   :  { %v1015_v0 = vadd.f32 %v1011_v63, %v195_v62  ;;  %v2300_v3 = vpop.f32.mrb[9].mxu1 }
0x1429   :  { %v2070_v19 = vmul.f32 -1.442695, %v1015_v0 }
0x142e   :  { %v1273_v5 = vpop.f32.mrb[10].mxu1 }
0x142f   :  { %v1277_v7 = vadd.f32 %v1273_v5, %v1160_v4  ;;  %v2331_v8 = vpop.f32.mrb[11].mxu1 }
0x1431   :  { %2577 = vtanh.f32 %v1277_v7  ;;  %v2080_v9 = vmul.f32 -1.442695, %v1277_v7 }
0x1433   :  { %2579 = vpow2.f32 %v2080_v9 }
0x143b   :  { %v2578_v11 = vpop.eup %2577 }
0x143c   :  { %1287 = vrot.lane.b32.xlu0 %v2578_v11, %s2683_s16 }
0x143d   :  { %v2580_v13 = vpop.eup %2579 }
0x143e   :  { %v1281_v60 = vadd.f32 1.0, %v2580_v13 }
0x1440   :  { %2581 = vrcp.f32 %v1281_v60 }
0x144a   :  { %v2582_v10 = vpop.eup %2581 }
0x144b   :  { %v1285_v14 = vmul.f32 0.0, %v2582_v10 }
0x14ae   :  { %v1288_v58 = vpop.permute.xlu0 %1287 }
0x14af   :  { %v1290_v12 = vmul.f32 %v2582_v10, %v1288_v58 }
0x14b1   :  { %1292 = vrot.lane.b32.xlu1 %v1290_v12, %s2683_s16 }
0x1523   :  { %v1293_v15 = vpop.permute.xlu1 %1292 }
0x1524   :  { %v1295_v16 = vadd.f32 %v1293_v15, %v1285_v14 }
0x1526   :  { %2583 = vtanh.f32 %v1295_v16 }
0x1527   :  { %2585 = vtanh.f32 %v1015_v0  ;;  %v1170_v0 = vadd.f32 %v2975_v6, %v2933_v37 }
0x1528   :  { %2587 = vpow2.f32 %v2070_v19 }
0x1530   :  { %v2584_v17 = vpop.eup %2583 }
0x1531   :  { %1298 = vrot.lane.b32.xlu0 %v2584_v17, %s2683_s16  ;;  %v2586_v18 = vpop.eup %2585 }
0x1532   :  { %v2588_v20 = vpop.eup %2587 }
0x1533   :  { %v1019_v21 = vadd.f32 1.0, %v2588_v20 }
0x1535   :  { %1025 = vrot.lane.b32.xlu0 %v2586_v18, %s2683_s16  ;;  %2589 = vrcp.f32 %v1019_v21  ;;  %v1175_v18 = vadd.f32 %v2931_v35, %v2975_v6 }
0x153f   :  { %v2590_v24 = vpop.eup %2589 }
0x1540   :  { %v1023_v28 = vmul.f32 %v2590_v24, %v2941_v47 }
0x15a3   :  { %v1299_v22 = vpop.permute.xlu0 %1298 }
0x15a4   :  { %v1301_v23 = vmul.f32 %v2582_v10, %v1299_v22 }
0x15a6   :  { %1304 = vrot.lane.b32.xlu1 %v1301_v23, %s2684_s3 }
0x15a7   :  { %v1026_v25 = vpop.permute.xlu0 %1025 }
0x15a8   :  { %v1028_v26 = vmul.f32 %v2590_v24, %v1026_v25 }
0x15aa   :  { %1030 = vrot.lane.b32.xlu0 %v1028_v26, %s2683_s16 }
0x1618   :  { %v1305_v27 = vpop.permute.xlu1 %1304 }
0x1619   :  { %2341 = vmatmul.mubr.msk.f32.vlgmr.msra.gmra.mrb[12].mxu1 %vm207_vm2, %v1305_v27 }
0x161a   :  { %2485 = vmatpush3.bf16.msra.mxu1 %v2945_v51  ;;  %2362 = vmatprep.mubr.msk.f32.mxu1 %vm2681_vm0, %v2682_v2 }
0x161b   :  { %2486 = vmatprep.subr.bf16.mxu1 %v2680_v1 }
0x161c   :  { %v1031_v29 = vpop.permute.xlu0 %1030 }
0x161d   :  { %v1033_v30 = vadd.f32 %v1031_v29, %v1023_v28 }
0x161e   :  { %2488 = vmatpush3.bf16.msra.mxu1 %v2949_v54 }
0x161f   :  { %2591 = vtanh.f32 %v1033_v30  ;;  %2495 = vmatprep.subr.bf16.mxu1 %v2680_v1 }
0x1629   :  { %v2592_v31 = vpop.eup %2591 }
0x162a   :  { %1036 = vrot.lane.b32.xlu0 %v2592_v31, %s2683_s16 }
0x169c   :  { %v1037_v32 = vpop.permute.xlu0 %1036 }
0x169d   :  { %v1039_v34 = vmul.f32 %v2590_v24, %v1037_v32 }
0x169f   :  { %1041 = vrot.lane.b32.xlu0 %v1039_v34, %s2684_s3 }
0x16ec   :  { %v1374_v40 = vpop.f32.mrb[12].mxu1 }
0x16ed   :  { %v1378_v61 = vadd.f32 %v1374_v40, %v1165_v36  ;;  %v2342_v41 = vpop.f32.mrb[13].mxu1  ;;  %v1180_v40 = vadd.f32 %v2975_v6, %v2938_v39 }
0x16ef   :  { %2593 = vtanh.f32 %v1378_v61  ;;  %v2082_v45 = vmul.f32 -1.442695, %v1378_v61 }
0x16f1   :  { %2595 = vpow2.f32 %v2082_v45 }
0x16f9   :  { %v2594_v42 = vpop.eup %2593 }
0x16fa   :  { %1388 = vrot.lane.b32.xlu1 %v2594_v42, %s2683_s16 }
0x16fb   :  { %v2596_v46 = vpop.eup %2595 }
0x16fc   :  { %v1382_v33 = vadd.f32 1.0, %v2596_v46 }
0x16fe   :  { %2597 = vrcp.f32 %v1382_v33 }
0x1708   :  { %v2598_v47 = vpop.eup %2597 }
0x1709   :  { %v1386_v50 = vmul.f32 %v2598_v47, %v1295_v16 }
0x1711   :  { %v1042_v43 = vpop.permute.xlu0 %1041 }
0x1712   :  { %1045 = vst.msk [vmem:[#allocation2 + $0x38] sm:$0xff] %vm207_vm2, %v1042_v43 }
0x1719   :  { %v1062_v44 = vld [vmem:[#allocation2 + $0x38] sm:$0xff] }
0x171a   :  { %2319 = vmatmul.mubr.msk.f32.gmra.mrb[20].mxu0 %vm207_vm2, %v1062_v44 }
0x171b   :  { %2351 = vmatprep.mubr.msk.f32.mxu0 %vm2681_vm0, %v2682_v2 }
0x176c   :  { %v1389_v48 = vpop.permute.xlu1 %1388 }
0x176d   :  { %v1391_v49 = vmul.f32 %v2598_v47, %v1389_v48 }
0x176f   :  { %1393 = vrot.lane.b32.xlu1 %v1391_v49, %s2683_s16 }
0x17e1   :  { %v1394_v52 = vpop.permute.xlu1 %1393 }
0x17e2   :  { %v1396_v53 = vadd.f32 %v1394_v52, %v1386_v50 }
0x17e4   :  { %2599 = vtanh.f32 %v1396_v53 }
0x17ed   :  { %v3002_v55 = vpop.f32.mrb[20].mxu0 }
0x17ee   :  { %v2600_v56 = vpop.eup %2599  ;;  %v3004_v57 = vpop.f32.mrb[21].mxu0 }
0x17ef   :  { %1399 = vrot.lane.b32.xlu1 %v2600_v56, %s2683_s16 }
0x1861   :  { %v1400_v59 = vpop.permute.xlu1 %1399 }
0x1862   :  { %v1402_v62 = vmul.f32 %v2598_v47, %v1400_v59 }
0x1864   :  { %1405 = vrot.lane.b32.xlu1 %v1402_v62, %s2684_s3  ;;  %v1185_v62 = vadd.f32 %v2936_v38, %v2975_v6 }
0x18d6   :  { %v1406_v63 = vpop.permute.xlu1 %1405 }
0x18d7   :  { %2352 = vmatmul.mubr.msk.f32.vlgmr.msra.gmra.mrb[22].mxu0 %vm207_vm2, %v1406_v63 }
0x18d8   :  { %2491 = vmatpush3.bf16.msra.mxu0 %v2945_v51  ;;  %2373 = vmatprep.mubr.msk.f32.mxu0 %vm2681_vm0, %v2682_v2 }
0x18d9   :  { %2492 = vmatprep.subr.bf16.mxu0 %v2680_v1 }
0x18dc   :  { %2494 = vmatpush3.bf16.msra.mxu0 %v2949_v54 }
0x18dd   :  { %2501 = vmatprep.subr.bf16.mxu0 %v2680_v1 }
0x19aa   :  { %v1475_v3 = vpop.f32.mrb[22].mxu0 }
0x19ab   :  { %v1479_v4 = vadd.f32 %v1475_v3, %v1170_v0  ;;  %v2353_v5 = vpop.f32.mrb[23].mxu0 }
0x19ad   :  { %2601 = vtanh.f32 %v1479_v4  ;;  %v2084_v8 = vmul.f32 -1.442695, %v1479_v4 }
0x19af   :  { %2603 = vpow2.f32 %v2084_v8 }
0x19b7   :  { %v2602_v7 = vpop.eup %2601 }
0x19b8   :  { %1489 = vrot.lane.b32.xlu0 %v2602_v7, %s2683_s16 }
0x19b9   :  { %v2604_v11 = vpop.eup %2603 }
0x19ba   :  { %v1483_v9 = vadd.f32 1.0, %v2604_v11 }
0x19bc   :  { %2605 = vrcp.f32 %v1483_v9 }
0x19c6   :  { %v2606_v13 = vpop.eup %2605 }
0x19c7   :  { %v1487_v58 = vmul.f32 %v2606_v13, %v1396_v53 }
0x1a2a   :  { %v1490_v60 = vpop.permute.xlu0 %1489 }
0x1a2b   :  { %v1492_v10 = vmul.f32 %v2606_v13, %v1490_v60 }
0x1a2d   :  { %1494 = vrot.lane.b32.xlu1 %v1492_v10, %s2683_s16 }
0x1a9f   :  { %v1495_v12 = vpop.permute.xlu1 %1494 }
0x1aa0   :  { %v1497_v37 = vadd.f32 %v1495_v12, %v1487_v58  ;;  %v1190_v58 = vadd.f32 %v2975_v6, %v3004_v57 }
0x1aa2   :  { %2607 = vtanh.f32 %v1497_v37 }
0x1aac   :  { %v2608_v14 = vpop.eup %2607 }
0x1aad   :  { %1500 = vrot.lane.b32.xlu0 %v2608_v14, %s2683_s16 }
0x1b1f   :  { %v1501_v15 = vpop.permute.xlu0 %1500 }
0x1b20   :  { %v1503_v16 = vmul.f32 %v2606_v13, %v1501_v15 }
0x1b22   :  { %1506 = vrot.lane.b32.xlu1 %v1503_v16, %s2684_s3 }
0x1b94   :  { %v1507_v17 = vpop.permute.xlu1 %1506 }
0x1b95   :  { %2363 = vmatmul.mubr.msk.f32.vlgmr.msra.gmra.mrb[14].mxu1 %vm207_vm2, %v1507_v17 }
0x1b96   :  { %2497 = vmatpush3.bf16.msra.mxu1 %v2945_v51  ;;  %2384 = vmatprep.mubr.msk.f32.mxu1 %vm2681_vm0, %v2682_v2 }
0x1b97   :  { %2498 = vmatprep.subr.bf16.mxu1 %v2680_v1 }
0x1b9a   :  { %2500 = vmatpush3.bf16.msra.mxu1 %v2949_v54 }
0x1b9b   :  { %2507 = vmatprep.subr.bf16.mxu1 %v2680_v1 }
0x1c68   :  { %v1576_v19 = vpop.f32.mrb[14].mxu1 }
0x1c69   :  { %v1580_v20 = vadd.f32 %v1576_v19, %v1175_v18  ;;  %v2364_v21 = vpop.f32.mrb[15].mxu1 }
0x1c6b   :  { %2609 = vtanh.f32 %v1580_v20  ;;  %v2086_v23 = vmul.f32 -1.442695, %v1580_v20 }
0x1c6d   :  { %2611 = vpow2.f32 %v2086_v23 }
0x1c75   :  { %v2610_v22 = vpop.eup %2609 }
0x1c76   :  { %1590 = vrot.lane.b32.xlu0 %v2610_v22, %s2683_s16 }
0x1c77   :  { %v2612_v24 = vpop.eup %2611 }
0x1c78   :  { %v1584_v25 = vadd.f32 1.0, %v2612_v24 }
0x1c7a   :  { %2613 = vrcp.f32 %v1584_v25 }
0x1c84   :  { %v2614_v26 = vpop.eup %2613 }
0x1c85   :  { %v1588_v29 = vmul.f32 %v2614_v26, %v1497_v37 }
0x1ce8   :  { %v1591_v27 = vpop.permute.xlu0 %1590 }
0x1ce9   :  { %v1593_v28 = vmul.f32 %v2614_v26, %v1591_v27 }
0x1ceb   :  { %1595 = vrot.lane.b32.xlu1 %v1593_v28, %s2683_s16  ;;  %v1195_v28 = vadd.f32 %v3002_v55, %v2975_v6  ;;  %v2095_v6 = vld [vmem:[%s3087_s7] ss:$0 sm:$0xff] }
0x1d5d   :  { %v1596_v30 = vpop.permute.xlu1 %1595 }
0x1d5e   :  { %v1598_v35 = vadd.f32 %v1596_v30, %v1588_v29 }
0x1d60   :  { %2615 = vtanh.f32 %v1598_v35 }
0x1d6a   :  { %v2616_v31 = vpop.eup %2615 }
0x1d6b   :  { %1601 = vrot.lane.b32.xlu0 %v2616_v31, %s2683_s16 }
0x1ddd   :  { %v1602_v32 = vpop.permute.xlu0 %1601 }
0x1dde   :  { %v1604_v34 = vmul.f32 %v2614_v26, %v1602_v32 }
0x1de0   :  { %1607 = vrot.lane.b32.xlu1 %v1604_v34, %s2684_s3 }
0x1e52   :  { %v1608_v36 = vpop.permute.xlu1 %1607 }
0x1e53   :  { %2374 = vmatmul.mubr.msk.f32.vlgmr.msra.gmra.mrb[24].mxu0 %vm207_vm2, %v1608_v36 }
0x1e54   :  { %2503 = vmatpush3.bf16.msra.mxu0 %v2945_v51  ;;  %2395 = vmatprep.mubr.msk.f32.mxu0 %vm2681_vm0, %v2682_v2 }
0x1e55   :  { %2504 = vmatprep.subr.bf16.mxu0 %v2680_v1 }
0x1e58   :  { %2506 = vmatpush3.bf16.msra.mxu0 %v2949_v54 }
0x1f26   :  { %v1677_v61 = vpop.f32.mrb[24].mxu0 }
0x1f27   :  { %v1681_v41 = vadd.f32 %v1677_v61, %v1180_v40  ;;  %v2375_v42 = vpop.f32.mrb[25].mxu0 }
0x1f29   :  { %2617 = vtanh.f32 %v1681_v41  ;;  %v2088_v44 = vmul.f32 -1.442695, %v1681_v41 }
0x1f2b   :  { %2619 = vpow2.f32 %v2088_v44 }
0x1f33   :  { %v2618_v43 = vpop.eup %2617 }
0x1f34   :  { %1691 = vrot.lane.b32.xlu0 %v2618_v43, %s2683_s16 }
0x1f35   :  { %v2620_v45 = vpop.eup %2619 }
0x1f36   :  { %v1685_v46 = vadd.f32 1.0, %v2620_v45 }
0x1f38   :  { %2621 = vrcp.f32 %v1685_v46 }
0x1f42   :  { %v2622_v33 = vpop.eup %2621 }
0x1f43   :  { %v1689_v49 = vmul.f32 %v2622_v33, %v1598_v35 }
0x1fa6   :  { %v1692_v47 = vpop.permute.xlu0 %1691 }
0x1fa7   :  { %v1694_v48 = vmul.f32 %v2622_v33, %v1692_v47 }
0x1fa9   :  { %1696 = vrot.lane.b32.xlu1 %v1694_v48, %s2683_s16 }
0x201b   :  { %v1697_v50 = vpop.permute.xlu1 %1696 }
0x201c   :  { %v1699_v39 = vadd.f32 %v1697_v50, %v1689_v49  ;;  %v2096_v50 = vld [vmem:[#allocation4] ss:$0 sm:$0xff] }
0x201e   :  { %2623 = vtanh.f32 %v1699_v39 }
0x2028   :  { %v2624_v52 = vpop.eup %2623 }
0x2029   :  { %1702 = vrot.lane.b32.xlu0 %v2624_v52, %s2683_s16 }
0x209b   :  { %v1703_v53 = vpop.permute.xlu0 %1702 }
0x209c   :  { %v1705_v56 = vmul.f32 %v2622_v33, %v1703_v53 }
0x209e   :  { %1708 = vrot.lane.b32.xlu1 %v1705_v56, %s2684_s3 }
0x2110   :  { %v1709_v59 = vpop.permute.xlu1 %1708 }
0x2111   :  { %2385 = vmatmul.mubr.msk.f32.vlgmr.msra.gmra.mrb[16].mxu1 %vm207_vm2, %v1709_v59 }
0x2112   :  { %2509 = vmatpush3.bf16.msra.mxu1 %v2945_v51  ;;  %2406 = vmatprep.mubr.msk.f32.mxu1 %vm2681_vm0, %v2682_v2 }
0x2113   :  { %2510 = vmatprep.subr.bf16.mxu1 %v2680_v1 }
0x2116   :  { %2512 = vmatpush3.bf16.msra.mxu1 %v2949_v54 }
0x21e4   :  { %v1778_v63 = vpop.f32.mrb[16].mxu1 }
0x21e5   :  { %v1782_v0 = vadd.f32 %v1778_v63, %v1185_v62  ;;  %v2386_v3 = vpop.f32.mrb[17].mxu1 }
0x21e7   :  { %2625 = vtanh.f32 %v1782_v0  ;;  %v2090_v5 = vmul.f32 -1.442695, %v1782_v0 }
0x21e9   :  { %2627 = vpow2.f32 %v2090_v5 }
0x21f1   :  { %v2626_v4 = vpop.eup %2625 }
0x21f2   :  { %1792 = vrot.lane.b32.xlu0 %v2626_v4, %s2683_s16 }
0x21f3   :  { %v2628_v51 = vpop.eup %2627 }
0x21f4   :  { %v1786_v7 = vadd.f32 1.0, %v2628_v51 }
0x21f6   :  { %2629 = vrcp.f32 %v1786_v7 }
0x2200   :  { %v2630_v2 = vpop.eup %2629 }
0x2201   :  { %v1790_v54 = vmul.f32 %v2630_v2, %v1699_v39 }
0x2264   :  { %v1793_v8 = vpop.permute.xlu0 %1792 }
0x2265   :  { %v1795_v1 = vmul.f32 %v2630_v2, %v1793_v8 }
0x2267   :  { %1797 = vrot.lane.b32.xlu1 %v1795_v1, %s2683_s16 }
0x22d9   :  { %v1798_v11 = vpop.permute.xlu1 %1797 }
0x22da   :  { %v1800_v38 = vadd.f32 %v1798_v11, %v1790_v54 }
0x22dc   :  { %2631 = vtanh.f32 %v1800_v38 }
0x22e6   :  { %v2632_v9 = vpop.eup %2631 }
0x22e7   :  { %1803 = vrot.lane.b32.xlu0 %v2632_v9, %s2683_s16 }
0x2359   :  { %v1804_v13 = vpop.permute.xlu0 %1803 }
0x235a   :  { %v1806_v60 = vmul.f32 %v2630_v2, %v1804_v13 }
0x235c   :  { %1809 = vrot.lane.b32.xlu1 %v1806_v60, %s2684_s3 }
0x23ce   :  { %v1810_v10 = vpop.permute.xlu1 %1809 }
0x23cf   :  { %2396 = vmatmul.mubr.msk.f32.vlgmr.msra.gmra.mrb[26].mxu0 %vm207_vm2, %v1810_v10 }
0x24a2   :  { %v1879_v12 = vpop.f32.mrb[26].mxu0 }
0x24a3   :  { %v1883_v37 = vadd.f32 %v1879_v12, %v1190_v58  ;;  %v2397_v14 = vpop.f32.mrb[27].mxu0 }
0x24a5   :  { %2633 = vtanh.f32 %v1883_v37  ;;  %v2092_v16 = vmul.f32 -1.442695, %v1883_v37 }
0x24a7   :  { %2635 = vpow2.f32 %v2092_v16 }
0x24af   :  { %v2634_v15 = vpop.eup %2633 }
0x24b0   :  { %1893 = vrot.lane.b32.xlu0 %v2634_v15, %s2683_s16 }
0x24b1   :  { %v2636_v17 = vpop.eup %2635 }
0x24b2   :  { %v1887_v18 = vadd.f32 1.0, %v2636_v17 }
0x24b4   :  { %2637 = vrcp.f32 %v1887_v18 }
0x24be   :  { %v2638_v19 = vpop.eup %2637 }
0x24bf   :  { %v1891_v22 = vmul.f32 %v2638_v19, %v1800_v38 }
0x2522   :  { %v1894_v20 = vpop.permute.xlu0 %1893 }
0x2523   :  { %v1896_v21 = vmul.f32 %v2638_v19, %v1894_v20 }
0x2525   :  { %1898 = vrot.lane.b32.xlu1 %v1896_v21, %s2683_s16 }
0x2597   :  { %v1899_v23 = vpop.permute.xlu1 %1898 }
0x2598   :  { %v1901_v57 = vadd.f32 %v1899_v23, %v1891_v22 }
0x259a   :  { %2639 = vtanh.f32 %v1901_v57 }
0x25a4   :  { %v2640_v24 = vpop.eup %2639 }
0x25a5   :  { %1904 = vrot.lane.b32.xlu0 %v2640_v24, %s2683_s16 }
0x2617   :  { %v1905_v25 = vpop.permute.xlu0 %1904 }
0x2618   :  { %v1907_v26 = vmul.f32 %v2638_v19, %v1905_v25 }
0x261a   :  { %1910 = vrot.lane.b32.xlu1 %v1907_v26, %s2684_s3 }
0x268c   :  { %v1911_v27 = vpop.permute.xlu1 %1910 }
0x268d   :  { %2407 = vmatmul.mubr.msk.f32.vlgmr.msra.gmra.mrb[18].mxu1 %vm207_vm2, %v1911_v27 }
0x2760   :  { %v1980_v29 = vpop.f32.mrb[18].mxu1 }
0x2761   :  { %v1984_v30 = vadd.f32 %v1980_v29, %v1195_v28  ;;  %v2408_v35 = vpop.f32.mrb[19].mxu1 }
0x2763   :  { %2641 = vtanh.f32 %v1984_v30  ;;  %v2094_v32 = vmul.f32 -1.442695, %v1984_v30 }
0x2765   :  { %2643 = vpow2.f32 %v2094_v32 }
0x276d   :  { %v2642_v31 = vpop.eup %2641 }
0x276e   :  { %1994 = vrot.lane.b32.xlu0 %v2642_v31, %s2683_s16 }
0x276f   :  { %v2644_v34 = vpop.eup %2643 }
0x2770   :  { %v1988_v36 = vadd.f32 1.0, %v2644_v34 }
0x2772   :  { %2645 = vrcp.f32 %v1988_v36 }
0x277c   :  { %v2646_v40 = vpop.eup %2645 }
0x277d   :  { %v1992_v55 = vmul.f32 %v2646_v40, %v1901_v57 }
0x27e0   :  { %v1995_v61 = vpop.permute.xlu0 %1994 }
0x27e1   :  { %v1997_v41 = vmul.f32 %v2646_v40, %v1995_v61 }
0x27e3   :  { %1999 = vrot.lane.b32.xlu1 %v1997_v41, %s2683_s16 }
0x27e7   :  { %2015 = vrot.lane.b32.xlu1 %v2095_v6, %s2684_s3 }
0x2855   :  { %v2000_v42 = vpop.permute.xlu1 %1999 }
0x2856   :  { %v2002_v43 = vadd.f32 %v2000_v42, %v1992_v55 }
0x2858   :  { %2647 = vtanh.f32 %v2002_v43 }
0x2859   :  { %v2016_v46 = vpop.permute.xlu1 %2015 }
0x2862   :  { %v2648_v44 = vpop.eup %2647 }
0x2863   :  { %2005 = vrot.lane.b32.xlu0 %v2648_v44, %s2683_s16 }
0x28d5   :  { %v2006_v45 = vpop.permute.xlu0 %2005 }
0x28d6   :  { %v2008_v33 = vmul.f32 %v2646_v40, %v2006_v45 }
0x28d8   :  { %v2018_v47 = vmul.f32 %v2016_v46, %v2008_v33 }
0x28da   :  { %2020 = vrot.lane.b32.xlu0 %v2018_v47, %s2684_s3 }
0x294c   :  { %v2021_v48 = vpop.permute.xlu0 %2020 }
0x294d   :  { %v2023_v49 = vsel %vm207_vm2, %v2021_v48, 0.0 }
0x294e   :  { %2024 = vadd.xlane.f32.xlu1 %v2023_v49 }
0x29db   :  { %v2025_v39 = vpop.xlane.xlu1 %2024 }
0x29dc   :  { %v2033_v52 = vadd.f32 %v2096_v50, %v2025_v39 }
0x29de   :  { %v2097_v53 = vmul.f32 -1.442695, %v2033_v52 }
0x29e0   :  { %2649 = vpow2.f32 %v2097_v53 }
0x29ea   :  { %v2650_v56 = vpop.eup %2649 }
0x29eb   :  { %v2037_v59 = vadd.f32 1.0, %v2650_v56 }
0x29ed   :  { %2651 = vrcp.f32 %v2037_v59 }
0x29f7   :  { %v2652_v62 = vpop.eup %2651 }
0x29f8   :  { %2041 = vst.msk [vmem:[%s3089_s9] sm:$0xff] %vm2040_vm3, %v2652_v62 }
0x29f9   :  { %2046 = vsyncpa [#allocation6], 1 }

</bundles_post_ra>
